<compile_context>
chip_gen: v7x
topology: tpu7x:2x2x1
jax: 0.10.0
libtpu: 0.0.40
codegen_flags: <defaults>
</compile_context>

<pallas_src>
import functools

import jax
import jax.numpy as jnp
from jax.experimental import pallas as pl
from jax.experimental.pallas import tpu as pltpu


def _round_up(v, m):
    return (v + m - 1) // m * m


def _vmem_capacity_bytes():
    try:
        info = pltpu.get_tpu_info()
        cap = getattr(info, "vmem_capacity_bytes", None)
        if cap:
            return int(cap)
    except Exception:
        pass
    return 64 * 1024 * 1024  # conservative default (v7x-sized)


def _fused_kernel(alpha, has_residual, x_ref, w_ref, b_ref, *rest):
    """Fused 3x3 conv (stride 1, pad 1) + bias [+ alpha*residual] + ReLU.

    Block shapes:
      x_ref : (1, TH+2, W+2, Cin_pad)   bf16  haloed NHWC input block
      w_ref : (3, 3*Cin_pad, TCo)       bf16  per-kh weight matrices (kw folded in K)
      b_ref : (1, TCo)                  f32   conv bias
      y_ref : (1, TH*W, TCo)            bf16  residual (only if has_residual)
      o_ref : (1, TH*W, TCo)            bf16  output
    """
    if has_residual:
        y_ref, o_ref = rest
    else:
        (o_ref,) = rest

    TH = x_ref.shape[1] - 2
    Wd = x_ref.shape[2] - 2
    C = x_ref.shape[3]

    xv = x_ref[0]                                          # (TH+2, W+2, C) bf16
    # Hoist the three kw shifts once per grid step (lane-aligned concat).
    shifted = jnp.concatenate([xv[:, kw:kw + Wd, :] for kw in range(3)], axis=-1)

    acc = None
    for kh in range(3):                                    # 3 matmuls, K = 3*C
        patch = shifted[kh:kh + TH].reshape(TH * Wd, 3 * C)
        d = jnp.dot(patch, w_ref[kh], preferred_element_type=jnp.float32)
        acc = d if acc is None else acc + d

    acc = acc + b_ref[...]                                 # conv bias (broadcast)
    if has_residual:
        acc = acc + alpha * y_ref[0].astype(jnp.float32)   # fused alpha*residual
    o_ref[0] = jnp.maximum(acc, 0.0).astype(o_ref.dtype)   # ReLU


def fused_conv_bias_add_act(x, weight, bias, y=None, alpha=1.0):
    """x: (N, Cin, H, W); weight: (Cout, Cin, 3, 3); bias: (Cout,);
    y: optional residual (N, Cout, H, W).  Returns ReLU(conv(x)+b+alpha*y), NCHW."""
    N, Cin, H, W = x.shape
    Cout, Cin_w, KH, KW = weight.shape
    assert (KH, KW) == (3, 3) and Cin_w == Cin, "3x3, stride 1, pad 1 conv only"
    alpha = float(alpha)
    has_res = y is not None

    # ---- per-generation VMEM sizing -----------------------------------------
    vmem_cap = _vmem_capacity_bytes()
    budget = max(12 << 20, min(40 << 20, vmem_cap // 4))         # ~16 MiB v7x, ~32 MiB v5e/v6e
    vmem_limit = int(max(32 << 20, min(vmem_cap * 3 // 4, 96 << 20)))

    # ---- channel padding / Cout tiling --------------------------------------
    Cin_pad = _round_up(Cin, 128)
    Cout_pad = _round_up(Cout, 128)
    w_full_bytes = 2 * 9 * Cin_pad * Cout_pad * 2                # double-buffered bf16
    if w_full_bytes <= budget // 2:
        TCo = Cout_pad                                           # weight fully resident
    else:
        TCo = 512 if budget >= (24 << 20) else 256
        Cout_pad = _round_up(Cout_pad, TCo)
    n_co = Cout_pad // TCo

    # ---- M tile (rows per grid step), counting in-kernel temporaries --------
    def _vmem_bytes(th):
        m = th * W
        x_blk = (th + 2) * (W + 2) * Cin_pad * 2
        w_blk = 9 * Cin_pad * TCo * 2
        o_blk = m * TCo * 2
        y_blk = m * TCo * 2 if has_res else 0
        tmp = (x_blk                                  # loaded x values
               + (th + 2) * W * 3 * Cin_pad * 2       # hoisted kw-shifted copy
               + m * 3 * Cin_pad * 2                  # per-kh patch
               + 2 * m * TCo * 4)                     # f32 partial sums / acc
        return 2 * (x_blk + w_blk + o_blk + y_blk + TCo * 4) + tmp

    TH = H
    while TH > 1 and _vmem_bytes(TH) > budget:
        TH = (TH + 1) // 2
    HB = -(-H // TH)                                  # ceil(H / TH)
    Hpad = HB * TH
    NB = N * HB

    # ---- input: NCHW -> NHWC bf16, spatial pad 1, lane-pad Cin --------------
    x_nhwc = jnp.transpose(x, (0, 2, 3, 1)).astype(jnp.bfloat16)
    xp = jnp.pad(x_nhwc, ((0, 0), (1, 1 + Hpad - H), (1, 1), (0, Cin_pad - Cin)))
    if HB == 1:
        xb = xp                                       # common path: no halo-stack copy
    else:
        # Fallback for very large images: overlapping (2-row halo) row blocks.
        xb = jnp.concatenate(
            [xp[:, i * TH:i * TH + TH + 2][:, None] for i in range(HB)], axis=1
        ).reshape(NB, TH + 2, W + 2, Cin_pad)

    # ---- weights: (Cout,Cin,3,3) -> (3, 3*Cin_pad, Cout_pad) bf16 -----------
    wt = jnp.transpose(weight, (2, 3, 1, 0))                       # (3,3,Cin,Cout)
    wt = jnp.pad(wt, ((0, 0), (0, 0), (0, Cin_pad - Cin), (0, Cout_pad - Cout)))
    wmat = wt.reshape(3, 3 * Cin_pad, Cout_pad).astype(jnp.bfloat16)
    bvec = jnp.pad(bias.astype(jnp.float32), (0, Cout_pad - Cout)).reshape(1, Cout_pad)

    # ---- BlockSpecs ----------------------------------------------------------
    x_spec = pl.BlockSpec((1, TH + 2, W + 2, Cin_pad), lambda b, c: (b, 0, 0, 0))
    w_spec = pl.BlockSpec((3, 3 * Cin_pad, TCo), lambda b, c: (0, 0, c))
    b_spec = pl.BlockSpec((1, TCo), lambda b, c: (0, c))
    yo_spec = pl.BlockSpec((1, TH * W, TCo), lambda b, c: (b, 0, c))

    in_specs = [x_spec, w_spec, b_spec]
    args = [xb, wmat, bvec]
    if has_res:
        y_nhwc = jnp.transpose(y, (0, 2, 3, 1)).astype(jnp.bfloat16)
        yb = jnp.pad(y_nhwc, ((0, 0), (0, Hpad - H), (0, 0), (0, Cout_pad - Cout)))
        yb = yb.reshape(NB, TH * W, Cout_pad)
        in_specs.append(yo_spec)
        args.append(yb)

    kernel = functools.partial(_fused_kernel, alpha, has_res)

    out_bytes = NB * TH * W * Cout_pad * 2
    flops = 2 * NB * TH * W * 9 * Cin_pad * Cout_pad
    bytes_accessed = (xb.size * 2 + wmat.size * 2 + bvec.size * 4
                      + out_bytes + (out_bytes if has_res else 0))

    out = pl.pallas_call(
        kernel,
        out_shape=jax.ShapeDtypeStruct((NB, TH * W, Cout_pad), jnp.bfloat16),
        grid=(NB, n_co),
        in_specs=in_specs,
        out_specs=yo_spec,
        compiler_params=pltpu.CompilerParams(
            dimension_semantics=("parallel", "parallel"),
            vmem_limit_bytes=vmem_limit),
        cost_estimate=pl.CostEstimate(
            flops=int(flops), transcendentals=0, bytes_accessed=int(bytes_accessed)),
    )(*args)

    out = out.reshape(N, Hpad, W, Cout_pad)[:, :H, :, :Cout]
    return jnp.transpose(out, (0, 3, 1, 2)).astype(x.dtype)       # back to NCHW


def _reference(x, weight, bias, y, alpha):
    conv = jax.lax.conv_general_dilated(
        x, weight, window_strides=(1, 1), padding=((1, 1), (1, 1)),
        dimension_numbers=("NCHW", "OIHW", "NCHW"))
    out = conv + bias[None, :, None, None]
    if y is not None:
        out = out + alpha * y
    return jnp.maximum(out, 0.0)


if __name__ == "__main__":
    key = jax.random.PRNGKey(0)
    k1, k2, k3, k4 = jax.random.split(key, 4)

    N, Cin, H, W = 2, 4, 16, 16
    Cout = 8

    x = jax.random.normal(k1, (N, Cin, H, W), jnp.float32)
    weight = jax.random.normal(k2, (Cout, Cin, 3, 3), jnp.float32) * 0.1
    bias = jax.random.normal(k3, (Cout,), jnp.float32) * 0.1
    y = jax.random.normal(k4, (N, Cout, H, W), jnp.float32)
    alpha = 0.5

    # With residual
    out = fused_conv_bias_add_act(x, weight, bias, y, alpha)
    out = jax.block_until_ready(out)
    ref = _reference(x, weight, bias, y, alpha)
    assert out.shape == (N, Cout, H, W)
    # bf16 MXU operands / bf16 streams with f32 accumulation -> loosened tolerance.
    assert jnp.allclose(out, ref, atol=5e-2, rtol=5e-2), "mismatch (residual)"

    # Without residual (separate kernel variant, no zeros streamed)
    out2 = fused_conv_bias_add_act(x, weight, bias)
    out2 = jax.block_until_ready(out2)
    ref2 = _reference(x, weight, bias, None, 1.0)
    assert jnp.allclose(out2, ref2, atol=5e-2, rtol=5e-2), "mismatch (no residual)"

    print("KERNEL_OK")
</pallas_src>

<mosaic_0001>
module attributes {stable_mosaic.version = 11 : i64} {
  func.func @_fused_kernel(%arg0: i32, %arg1: i32, %arg2: memref<1x18x18x128xbf16, #tpu.memory_space<vmem>>, %arg3: memref<3x384x128xbf16, #tpu.memory_space<vmem>>, %arg4: memref<1x128xf32, #tpu.memory_space<vmem>>, %arg5: memref<1x256x128xbf16, #tpu.memory_space<vmem>>, %arg6: memref<1x256x128xbf16, #tpu.memory_space<vmem>>) attributes {dimension_semantics = [#tpu.dimension_semantics<parallel>, #tpu.dimension_semantics<parallel>], iteration_bounds = array<i64: 2, 1>, scalar_prefetch = 0 : i64, scratch_operands = 0 : i64, tpu.core_type = #tpu.core_type<tc>, window_params = [{transform_indices = @transform_0, window_bounds = array<i64: 1, 18, 18, 128>}, {transform_indices = @transform_1, window_bounds = array<i64: 3, 384, 128>}, {transform_indices = @transform_2, window_bounds = array<i64: 1, 128>}, {transform_indices = @transform_3, window_bounds = array<i64: 1, 256, 128>}, {transform_indices = @transform_4, window_bounds = array<i64: 1, 256, 128>}]} {
    %c0 = arith.constant 0 : index
    %c0_0 = arith.constant 0 : index
    %c0_1 = arith.constant 0 : index
    %c0_2 = arith.constant 0 : index
    %0 = vector.load %arg2[%c0, %c0_0, %c0_1, %c0_2] : memref<1x18x18x128xbf16, #tpu.memory_space<vmem>>, vector<1x18x18x128xbf16>
    %1 = vector.shape_cast %0 : vector<1x18x18x128xbf16> to vector<18x18x128xbf16>
    %2 = vector.extract_strided_slice %1 {offsets = [0, 0, 0], sizes = [18, 16, 128], strides = [1, 1, 1]} : vector<18x18x128xbf16> to vector<18x16x128xbf16>
    %3 = vector.extract_strided_slice %1 {offsets = [0, 1, 0], sizes = [18, 16, 128], strides = [1, 1, 1]} : vector<18x18x128xbf16> to vector<18x16x128xbf16>
    %4 = vector.extract_strided_slice %1 {offsets = [0, 2, 0], sizes = [18, 16, 128], strides = [1, 1, 1]} : vector<18x18x128xbf16> to vector<18x16x128xbf16>
    %5 = tpu.concatenate %2, %3, %4 in 2 : vector<18x16x128xbf16>, vector<18x16x128xbf16>, vector<18x16x128xbf16> -> vector<18x16x384xbf16>
    %6 = vector.extract_strided_slice %5 {offsets = [0, 0, 0], sizes = [16, 16, 384], strides = [1, 1, 1]} : vector<18x16x384xbf16> to vector<16x16x384xbf16>
    %7 = vector.shape_cast %6 : vector<16x16x384xbf16> to vector<256x384xbf16>
    %c0_3 = arith.constant 0 : index
    %c0_4 = arith.constant 0 : index
    %c0_5 = arith.constant 0 : index
    %8 = vector.load %arg3[%c0_3, %c0_4, %c0_5] : memref<3x384x128xbf16, #tpu.memory_space<vmem>>, vector<1x384x128xbf16>
    %9 = vector.shape_cast %8 : vector<1x384x128xbf16> to vector<384x128xbf16>
    %cst = arith.constant dense<0.000000e+00> : vector<256x128xf32>
    %10 = tpu.matmul %7, %9, %cst {dimension_numbers = #tpu.dot_dimension_numbers<[1], [0], [0], [1], [0, 0, 1, 1], [], []>} : vector<256x384xbf16>, vector<384x128xbf16>, vector<256x128xf32> -> vector<256x128xf32>
    %11 = vector.extract_strided_slice %5 {offsets = [1, 0, 0], sizes = [16, 16, 384], strides = [1, 1, 1]} : vector<18x16x384xbf16> to vector<16x16x384xbf16>
    %12 = vector.shape_cast %11 : vector<16x16x384xbf16> to vector<256x384xbf16>
    %c1 = arith.constant 1 : index
    %c0_6 = arith.constant 0 : index
    %c0_7 = arith.constant 0 : index
    %13 = vector.load %arg3[%c1, %c0_6, %c0_7] : memref<3x384x128xbf16, #tpu.memory_space<vmem>>, vector<1x384x128xbf16>
    %14 = vector.shape_cast %13 : vector<1x384x128xbf16> to vector<384x128xbf16>
    %cst_8 = arith.constant dense<0.000000e+00> : vector<256x128xf32>
    %15 = tpu.matmul %12, %14, %cst_8 {dimension_numbers = #tpu.dot_dimension_numbers<[1], [0], [0], [1], [0, 0, 1, 1], [], []>} : vector<256x384xbf16>, vector<384x128xbf16>, vector<256x128xf32> -> vector<256x128xf32>
    %16 = arith.addf %10, %15 : vector<256x128xf32>
    %17 = vector.extract_strided_slice %5 {offsets = [2, 0, 0], sizes = [16, 16, 384], strides = [1, 1, 1]} : vector<18x16x384xbf16> to vector<16x16x384xbf16>
    %18 = vector.shape_cast %17 : vector<16x16x384xbf16> to vector<256x384xbf16>
    %c2 = arith.constant 2 : index
    %c0_9 = arith.constant 0 : index
    %c0_10 = arith.constant 0 : index
    %19 = vector.load %arg3[%c2, %c0_9, %c0_10] : memref<3x384x128xbf16, #tpu.memory_space<vmem>>, vector<1x384x128xbf16>
    %20 = vector.shape_cast %19 : vector<1x384x128xbf16> to vector<384x128xbf16>
    %cst_11 = arith.constant dense<0.000000e+00> : vector<256x128xf32>
    %21 = tpu.matmul %18, %20, %cst_11 {dimension_numbers = #tpu.dot_dimension_numbers<[1], [0], [0], [1], [0, 0, 1, 1], [], []>} : vector<256x384xbf16>, vector<384x128xbf16>, vector<256x128xf32> -> vector<256x128xf32>
    %22 = arith.addf %16, %21 : vector<256x128xf32>
    %c0_12 = arith.constant 0 : index
    %c0_13 = arith.constant 0 : index
    %23 = vector.load %arg4[%c0_12, %c0_13] : memref<1x128xf32, #tpu.memory_space<vmem>>, vector<1x128xf32>
    %24 = vector.broadcast %23 : vector<1x128xf32> to vector<256x128xf32>
    %25 = arith.addf %22, %24 : vector<256x128xf32>
    %c0_14 = arith.constant 0 : index
    %c0_15 = arith.constant 0 : index
    %c0_16 = arith.constant 0 : index
    %26 = vector.load %arg5[%c0_14, %c0_15, %c0_16] : memref<1x256x128xbf16, #tpu.memory_space<vmem>>, vector<1x256x128xbf16>
    %27 = vector.shape_cast %26 : vector<1x256x128xbf16> to vector<256x128xbf16>
    %28 = arith.extf %27 : vector<256x128xbf16> to vector<256x128xf32>
    %cst_17 = arith.constant 5.000000e-01 : f32
    %29 = vector.broadcast %cst_17 : f32 to vector<256x128xf32>
    %30 = arith.mulf %29, %28 : vector<256x128xf32>
    %31 = arith.addf %25, %30 : vector<256x128xf32>
    %cst_18 = arith.constant 0.000000e+00 : f32
    %32 = vector.broadcast %cst_18 : f32 to vector<256x128xf32>
    %33 = arith.maximumf %31, %32 : vector<256x128xf32>
    %34 = arith.truncf %33 : vector<256x128xf32> to vector<256x128xbf16>
    %c0_19 = arith.constant 0 : index
    %c0_20 = arith.constant 0 : index
    %c0_21 = arith.constant 0 : index
    %35 = vector.load %arg6[%c0_19, %c0_20, %c0_21] : memref<1x256x128xbf16, #tpu.memory_space<vmem>>, vector<1x256x128xbf16>
    %36 = vector.shape_cast %35 : vector<1x256x128xbf16> to vector<256x128xbf16>
    %37 = vector.shape_cast %34 : vector<256x128xbf16> to vector<1x256x128xbf16>
    tpu.vector_store %arg6[%c0_19, %c0_20, %c0_21], %37 {strides = array<i32>} : memref<1x256x128xbf16, #tpu.memory_space<vmem>>, vector<1x256x128xbf16>,
    return
  }
  func.func @transform_0(%arg0: i32, %arg1: i32) -> (i32, i32, i32, i32) {
    %c0_i32 = arith.constant 0 : i32
    %c0_i32_0 = arith.constant 0 : i32
    %c0_i32_1 = arith.constant 0 : i32
    %c0_i32_2 = arith.constant 0 : i32
    return %arg0, %c0_i32, %c0_i32_0, %c0_i32_1 : i32, i32, i32, i32
  }
  func.func @transform_1(%arg0: i32, %arg1: i32) -> (i32, i32, i32) {
    %c0_i32 = arith.constant 0 : i32
    %c0_i32_0 = arith.constant 0 : i32
    %c0_i32_1 = arith.constant 0 : i32
    return %c0_i32, %c0_i32_0, %arg1 : i32, i32, i32
  }
  func.func @transform_2(%arg0: i32, %arg1: i32) -> (i32, i32) {
    %c0_i32 = arith.constant 0 : i32
    %c0_i32_0 = arith.constant 0 : i32
    return %c0_i32, %arg1 : i32, i32
  }
  func.func @transform_3(%arg0: i32, %arg1: i32) -> (i32, i32, i32) {
    %c0_i32 = arith.constant 0 : i32
    %c0_i32_0 = arith.constant 0 : i32
    return %arg0, %c0_i32, %arg1 : i32, i32, i32
  }
  func.func @transform_4(%arg0: i32, %arg1: i32) -> (i32, i32, i32) {
    %c0_i32 = arith.constant 0 : i32
    %c0_i32_0 = arith.constant 0 : i32
    return %arg0, %c0_i32, %arg1 : i32, i32, i32
  }
}

</mosaic_0001>

<bundles_post_ra>
// kernel: tpu_custom_call.1
= control target key start
LH: loop header
LB: loop body
LE: loop exit
PB: predicated region body
PF: predicated region fallthrough
CT: control target
= control target key end

     0   :  { %9 = vsyncpa [#allocation3], 0  ;;  %s5662_s0 = inlined_call_operand.vmem [shape: bf16[2,18,18,128], index: 0, kind: input, shape index: {}]   ;;  %s5663_s1 = inlined_call_operand.vmem [shape: bf16[3,384,128], index: 1, kind: input, shape index: {}]   ;;  %s5664_s2 = inlined_call_operand.vmem [shape: f32[1,128], index: 2, kind: input, shape index: {}]   ;;  %s5665_s3 = inlined_call_operand.hbm [shape: bf16[2,256,128], index: 3, kind: input, shape index: {}]   ;;  %s5666_s4 = inlined_call_operand.hbm [shape: bf16[2,256,128], index: 4, kind: output, shape index: {}]  }
   0x1   :  { %11 = vsyncpa [#allocation3 + $0x1], 0 }
   0x2   :  { %12 = vsyncpa [#allocation4], 0 }
   0x3   :  { %14 = vsyncpa [#allocation4 + $0x1], 0  ;;  %s4402_s15 = smov 0   ;;  %s4404_s16 = smov 0  }
   0x4   :  { %s4406_s17 = smov 0   ;;  %s4408_s18 = smov 0  }
   0x5   :  { %s4410_s19 = smov 0   ;;  %s4412_s20 = smov 0  }
   0x6 LB: > { %s2883_s21 = sadd.s32 4294967295, %s4369_s20   ;;  %s2884_s22 = sadd.s32 4294967294, %s4369_s20   ;;  %s4369_s20 = sphi %s4412_s20, %s20_s20   ;;  %s4365_s19 = sphi %s4410_s19, %s5683_s19   ;;  %s4361_s18 = sphi %s4408_s18, %s5682_s18   ;;  %s4357_s17 = sphi %s4406_s17, %s5681_s17   ;;  %s4353_s16 = sphi %s4404_s16, %s5680_s16   ;;  %s4349_s15 = sphi %s4402_s15, %s5679_s15  }
   0x7   : > { %s32_s23 = sadd.s32 1, %s4365_s19  ;;  %s119_s24 = sadd.s32 1, %s4357_s17 }
   0x8   : > { %p34_p0 = scmp.ge.s32.totalorder %s32_s23, 2  ;;  %p126_p1 = scmp.ne.s32.totalorder %s4357_s17, %s4353_s16 }
   0x9   : > { %p127_p2 = scmp.eq.s32.totalorder %s4369_s20, 0  ;;  %p132_p3 = scmp.ne.s32.totalorder %s4353_s16, %s4349_s15 }
   0xa   : > { %s5685_s23 = smov (%p34_p0, %s32_s23), 0  ;;  %p133_p5 = scmp.eq.s32.totalorder %s2883_s21, 0 }
   0xb   : > { %p4443_p4 = por %p127_p2, %p126_p1  ;;  %s114_s26 = ssub.s32 %s4365_s19, %s5685_s23 }
   0xc   : > { %p158_p6 = scmp.eq.s32.totalorder %s2883_s21, 1  ;;  %p117_p7 = scmp.eq.s32.totalorder %s114_s26, 0 }
   0xd   : > { %p4449_p8 = por %p133_p5, %p132_p3  ;;  %p164_p10 = scmp.eq.s32.totalorder %s2884_s22, 1 }
   0xe   : > { %p4453_p9 = por %p158_p6, %p126_p1  ;;  %p4087_p13 = scmp.lt.s32.totalorder %s4369_s20, 2 }
   0xf   : > { %s4458_s29 = scalar_select %p117_p7, %s4357_s17, %s119_s24  }
  0x10   : > { %s5670_s28 = scalar_select %p4453_p9, 1, 0 }
  0x11   : > { %p4460_p11 = por %p164_p10, %p132_p3  ;;  %s205_s5 = sand.u32 1, %s4357_s17  }
  0x12   : > { %s2889_s6 = sshll.u32 %s205_s5, 7  ;;  %s3138_s7 = sshll.u32 %s4365_s19, 11 }
  0x13   : > { %s5671_s30 = scalar_select %p4460_p11, 1, 0 }
  0x14   : > { %s4471_s10 = scalar_lea.hbm %s5665_s3, %s3138_s7  ;;  %s209_s11 = scalar_lea.vmem [#allocation2], %s2889_s6 }
  0x15   : > { %s217_s12 = sshll.u32 %s209_s11, 4  ;;  %p4477_p0 = pnand %p4087_p13, %p4443_p4  ;;  %s4473_s12 = int_to_ptr.vmem [resolvable:$true] %s217_s12 }
  0x16   : > { %s4482_s14 = scalar_lea.sflag [#allocation3], %s205_s5  ;;  %s4257_s21 = scalar_lea.hbm %s4471_s10, 2048 }
  0x17   : > { %p4258_p2 = scmp.ne.s32.totalorder %s4471_s10, %s4257_s21  ;;  %p4259_p3 = pneg %p4477_p0 }
  0x18   : > { %s4262_s25 = scalar_lea.hbm %s5665_s3, 4096  ;;  %p4263_p4 = scmp.lt.u32.totalorder %s4471_s10, %s5665_s3 }
  0x19   : > { %p4260_p5 = pnand %p4259_p3, %p4258_p2  ;;  %p4264_p7 = scmp.lt.u32.totalorder %s4262_s25, %s4257_s21 }
  0x1a   : > { %p4266_p13 = scmp.lt.u32.totalorder %s4257_s21, %s4471_s10 }
  0x1b   : > { %p4261_p6 = pneg %p4260_p5  ;;  %p4265_p10 = por %p4264_p7, %p4263_p4 }
  0x1d   : > { %p4267_p12 = por %p4266_p13, %p4265_p10 }
  0x1f   : > { %p4268_p1 = pnand %p4267_p12, %p4261_p6 }
  0x21   : > { %4271 = shalt.err (!%p4268_p1)
}
  0x22   : > { %s4272_s5 = scalar_lea.vmem %s4473_s12, 2048  ;;  %s4371_s7 = smov [#allocation2]  }
  0x23   : > { %p4273_p2 = scmp.ne.s32.totalorder %s4473_s12, %s4272_s5  ;;  %s4277_s8 = sshll.u32 %s4371_s7, 4  ;;  %s4278_s8 = int_to_ptr.vmem [resolvable:$false] %s4277_s8 }
  0x24   : > { %s4279_s9 = scalar_lea.vmem %s4278_s8, 4096  ;;  %p4280_p9 = scmp.lt.s32.totalorder %s4473_s12, %s4278_s8 }
  0x25   : > { %p4275_p5 = pnand %p4273_p2, %p4259_p3  ;;  %p4281_p4 = scmp.lt.s32.totalorder %s4279_s9, %s4272_s5 }
  0x27   : > { %p4276_p11 = pneg %p4275_p5  ;;  %p4282_p7 = por %p4281_p4, %p4280_p9 }
  0x29   : > { %p4283_p10 = pnand %p4282_p7, %p4276_p11 }
  0x2b   : > { %4286 = shalt.err (!%p4283_p10)
}
  0x2c   : > { %s4372_s11 = smov 64   ;;  %s4373_s21 = smov 4  }
  0x2d   : > { %4082 = dma.hbm_to_vmem [thread:$0]  (!%p4477_p0), %s4471_s10, 2048, %s4473_s12, %s4482_s14, %s4372_s11, %s4372_s11, %s4373_s21  }
  0x2e   : > { %p225_p12 = scmp.lt.s32.totalorder %s4369_s20, 3  ;;  %p5673_p1 = scmp.ge.s32.totalorder %s4369_s20, 1 }
  0x30   : > { %p226_p3 = pnand %p5673_p1, %p225_p12 }
  0x32   : > { %229 = sbr.rel (%p226_p3) target bundleno = 619 (0x26b), region = 36 }
  0x39   : > { %s4514_s22 = sand.u32 1, %s4353_s16  }
  0x3a   : > { %s2893_s24 = sshll.u32 %s4514_s22, 7  ;;  %s232_s25 = scalar_lea.sflag [#allocation3], %s4514_s22 }
  0x3b   : > { %s4520_s26 = scalar_lea.vmem [#allocation2], %s2893_s24 }
  0x3c   : > { %4340 = dma.done.wait (%p4449_p8), %s232_s25, 2048  }
  0x3d   : > { %4342 = vsyncadd (%p4449_p8), %s232_s25, 4294965248  ;;  %v4141_v0 = vld [vmem:[%s5663_s1 + $0x100] sm:$0xff]   ;;  %v4144_v3 = vld [vmem:[%s5663_s1 + $0x108] sm:$0xff]   ;;  %p272_p8 = scmp.lt.s32.totalorder %s4361_s18, 1  ;;  %vm501_vm0 = vsmask.f32 7424 }
  0x3e   : > { %v4532_v1 = vld [vmem:[%s5663_s1 + $0x140] sm:$0xff]   ;;  %3346 = vmatprep.subr.bf16.mxu0 %v4141_v0  ;;  %v4545_v4 = vld [vmem:[%s5663_s1 + $0x148] sm:$0xff]   ;;  %v4147_v6 = vld [vmem:[%s5663_s1 + $0x110] sm:$0xff]   ;;  %vm736_vm1 = vcmask 1046528   ;;  %s5507_s14 = scalar_lea.vmem [#allocation5], %s2893_s24  ;;  %s3171_s24 = sshll.u32 %s4361_s18, 11 }
  0x3f   : > { %v4143_v2 = vld [vmem:[%s5663_s1 + $0xc0] sm:$0xff]   ;;  %3898 = vmatprep.subr.bf16.mxu1 %v4532_v1  ;;  %v4146_v5 = vld [vmem:[%s5663_s1 + $0xc8] sm:$0xff]   ;;  %v4557_v7 = vld [vmem:[%s5663_s1 + $0x150] sm:$0xff]   ;;  %s273_s13 = scalar_select %p272_p8, %s4361_s18, 1 }
  0x40   : > { %3347 = vmatpush3.bf16.msra.mxu0 %v4143_v2  ;;  %3906 = vmatpush3.bf16.msra.mxu1 %v4532_v1  ;;  %v4149_v8 = vld [vmem:[%s5663_s1 + $0xd0] sm:$0xff]   ;;  %v4150_v9 = vld [vmem:[%s5663_s1 + $0x118] sm:$0xff]   ;;  %v4153_v12 = vld [vmem:[%s5663_s1 + $0x120] sm:$0xff]   ;;  %s5609_s5 = scalar_lea.hbm %s5666_s4, %s3171_s24  ;;  %s2745_s18 = scalar_lea.sflag [#allocation4], %s4514_s22 }
  0x41   : > { %3348 = vmatprep.subr.bf16.mxu0 %v4144_v3  ;;  %3899 = vmatprep.subr.bf16.mxu1 %v4545_v4  ;;  %v4570_v10 = vld [vmem:[%s5663_s1 + $0x158] sm:$0xff]   ;;  %v4584_v13 = vld [vmem:[%s5663_s1 + $0x160] sm:$0xff]   ;;  %v4156_v15 = vld [vmem:[%s5663_s1 + $0x128] sm:$0xff]   ;;  %s4074_s9 = smul.u32 216, %s273_s13  ;;  %p5676_p11 = scmp.ne.s32.totalorder %s5670_s28, 0 }
  0x42   : > { %v4152_v11 = vld [vmem:[%s5663_s1 + $0xd8] sm:$0xff]   ;;  %v4155_v14 = vld [vmem:[%s5663_s1 + $0xe0] sm:$0xff]   ;;  %v4598_v16 = vld [vmem:[%s5663_s1 + $0x168] sm:$0xff]   ;;  %s4374_s27 = smov [#allocation5]  }
  0x43   : > { %v4158_v17 = vld [vmem:[%s5663_s1 + $0xe8] sm:$0xff]   ;;  %v4159_v18 = vld [vmem:[%s5663_s1 + $0x130] sm:$0xff]   ;;  %s4619_s8 = scalar_lea.vmem %s5662_s0, %s4074_s9  ;;  %v4162_v21 = vld [vmem:[%s5663_s1 + $0x138] sm:$0xff]   ;;  %s4291_s11 = sshll.u32 %s4374_s27, 4  ;;  %s4292_s11 = int_to_ptr.vmem [resolvable:$false] %s4291_s11 }
  0x44   : > { %3349 = vmatpush3.bf16.msra.mxu0 %v4146_v5  ;;  %3907 = vmatpush3.bf16.msra.mxu1 %v4545_v4  ;;  %v4611_v19 = vld [vmem:[%s5663_s1 + $0x170] sm:$0xff]   ;;  %v4627_v22 = vld [vmem:[%s5663_s1 + $0x178] sm:$0xff]   ;;  %v4171_v36 = vld [vmem:[%s5663_s1 + $0x40] sm:$0xff]   ;;  %s4293_s21 = scalar_lea.vmem %s4292_s11, 4096 }
  0x45   : > { %3350 = vmatprep.subr.bf16.mxu0 %v4147_v6  ;;  %3900 = vmatprep.subr.bf16.mxu1 %v4557_v7  ;;  %v4161_v20 = vld [vmem:[%s5663_s1 + $0xf0] sm:$0xff]   ;;  %v4164_v25 = vld [vmem:[%s5663_s1 + $0xf8] sm:$0xff]   ;;  %v4660_v37 = vld [vmem:[%s4619_s8 + $0x80] ss:$0 sps:$4 sm:$0x11]  }
  0x46   : > { %v4632_v23 = vld [vmem:[%s4619_s8 + $0xc] sm:$0xff]   ;;  %v4635_v24 = vld [vmem:[%s4619_s8 + $0x14] ss:$0 sps:$4 sm:$0x11]   ;;  %v4652_v32 = vld [vmem:[%s4619_s8 + $0x78] sm:$0xff]   ;;  %v768_v41 = vrot.slane %v4660_v37, 1 }
  0x47   : > { %v4641_v26 = vld [vmem:[%s4619_s8 + $0x6c] sm:$0xff]   ;;  %v515_v27 = vshrl.u32 %v4632_v23, 16  ;;  %v517_v28 = vshll.u32 %v4632_v23, 16  ;;  %v522_v29 = vshll.u32 %v4635_v24, 16  ;;  %v767_v38 = vrot.slane %v4652_v32, 1  ;;  %v4172_v42 = vld [vmem:[%s5663_s1] sm:$0xff]  }
  0x48   : > { %3351 = vmatpush3.bf16.msra.mxu0 %v4149_v8  ;;  %3908 = vmatpush3.bf16.msra.mxu1 %v4557_v7  ;;  %v4647_v30 = vld [vmem:[%s4619_s8 + $0x74] ss:$0 sps:$4 sm:$0x11]   ;;  %v764_v31 = vrot.slane %v4641_v26, 1  ;;  %v4173_v44 = vld [vmem:[%s5663_s1 + $0x48] sm:$0xff]   ;;  %v4689_v47 = vld [vmem:[%s4619_s8 + $0x18] sm:$0xff]  }
  0x49   : > { %3352 = vmatprep.subr.bf16.mxu0 %v4150_v9  ;;  %3901 = vmatprep.subr.bf16.mxu1 %v4570_v10  ;;  %v519_v33 = vrot.slane %v517_v28, 1  ;;  %v524_v34 = vrot.slane %v522_v29, 1  ;;  %v765_v35 = vrot.slane %v4647_v30, 1  ;;  %v4681_v45 = vsel %vm736_vm1, %v767_v38, %v768_v41  ;;  %v4174_v46 = vld [vmem:[%s5663_s1 + $0x8] sm:$0xff]   ;;  %v4706_v54 = vld [vmem:[%s4619_s8 + $0x90] sm:$0xff]   ;;  %v4183_v2 = vld [vmem:[%s5663_s1 + $0x58] sm:$0xff]  }
  0x4a   : > { %v4692_v48 = vld [vmem:[%s4619_s8 + $0x20] ss:$0 sps:$4 sm:$0x11]   ;;  %v527_v49 = vshrl.u32 %v4689_v47, 16  ;;  %v529_v50 = vshll.u32 %v4689_v47, 16  ;;  %v4699_v52 = vld [vmem:[%s4619_s8 + $0x84] sm:$0xff]  }
  0x4b   : > { %v520_v39 = vor.u32 %v519_v33, %v515_v27  ;;  %v4664_v40 = vsel %vm736_vm1, %v764_v31, %v765_v35  ;;  %v534_v51 = vshll.u32 %v4692_v48, 16  ;;  %v4703_v53 = vld [vmem:[%s4619_s8 + $0x8c] ss:$0 sps:$4 sm:$0x11]   ;;  %v770_v57 = vrot.slane %v4699_v52, 1  ;;  %v4181_v58 = vld [vmem:[%s5663_s1 + $0x50] sm:$0xff]  }
  0x4c   : > { %3353 = vmatpush3.bf16.msra.mxu0 %v4152_v11  ;;  %3909 = vmatpush3.bf16.msra.mxu1 %v4570_v10  ;;  %v531_v55 = vrot.slane %v529_v50, 1  ;;  %v771_v59 = vrot.slane %v4703_v53, 1  ;;  %v4714_v60 = vld [vmem:[%s4619_s8 + $0x98] ss:$0 sps:$4 sm:$0x11]   ;;  %v773_v61 = vrot.slane %v4706_v54, 1 }
  0x4d   : > { %3354 = vmatprep.subr.bf16.mxu0 %v4153_v12  ;;  %3902 = vmatprep.subr.bf16.mxu1 %v4584_v13  ;;  %v4672_v43 = vsel %vm501_vm0, %v520_v39, %v524_v34  ;;  %v536_v56 = vrot.slane %v534_v51, 1  ;;  %v4182_v62 = vld [vmem:[%s5663_s1 + $0x10] sm:$0xff]   ;;  %v4184_v5 = vld [vmem:[%s5663_s1 + $0x18] sm:$0xff]   ;;  %v4743_v6 = vld [vmem:[%s4619_s8 + $0x24] sm:$0xff]  }
  0x4e   : > { %3786 = vmatprep.mubr.bf16.mxu1 %v4664_v40  ;;  %1082 = vmatprep.mubr.bf16.mxu0 %v4672_v43  ;;  %v532_v63 = vor.u32 %v531_v55, %v527_v49  ;;  %v4723_v0 = vsel %vm736_vm1, %v770_v57, %v771_v59  ;;  %v4746_v8 = vld [vmem:[%s4619_s8 + $0x2c] ss:$0 sps:$4 sm:$0x11]   ;;  %v539_v9 = vshrl.u32 %v4743_v6, 16  ;;  %v541_v11 = vshll.u32 %v4743_v6, 16  ;;  %v4192_v29 = vld [vmem:[%s5663_s1 + $0x20] sm:$0xff]  }
  0x4f   : > { %v546_v12 = vshll.u32 %v4746_v8, 16  ;;  %v4768_v27 = vld [vmem:[%s4619_s8 + $0xb0] ss:$0 sps:$4 sm:$0x11]   ;;  %v4193_v35 = vld [vmem:[%s5663_s1 + $0x68] sm:$0xff]   ;;  %v4807_v49 = vld [vmem:[%s4619_s8 + $0xb4] sm:$0xff]  }
  0x50   : > { %3355 = vmatpush3.bf16.msra.mxu0 %v4155_v14  ;;  %3910 = vmatpush3.bf16.msra.mxu1 %v4584_v13  ;;  %v4730_v3 = vsel %vm501_vm0, %v532_v63, %v536_v56  ;;  %v4753_v14 = vld [vmem:[%s4619_s8 + $0x9c] sm:$0xff]   ;;  %v780_v34 = vrot.slane %v4768_v27, 1  ;;  %v4194_v38 = vld [vmem:[%s5663_s1 + $0x28] sm:$0xff]   ;;  %v4797_v39 = vld [vmem:[%s4619_s8 + $0x30] sm:$0xff]   ;;  %v782_v57 = vrot.slane %v4807_v49, 1 }
  0x51   : > { %3356 = vmatprep.subr.bf16.mxu0 %v4156_v15  ;;  %3903 = vmatprep.subr.bf16.mxu1 %v4598_v16  ;;  %v4757_v15 = vld [vmem:[%s4619_s8 + $0xa4] ss:$0 sps:$4 sm:$0x11]   ;;  %v4800_v41 = vld [vmem:[%s4619_s8 + $0x38] ss:$0 sps:$4 sm:$0x11]  }
  0x52   : > { %v4811_v50 = vld [vmem:[%s4619_s8 + $0xbc] ss:$0 sps:$4 sm:$0x11]   ;;  %v4814_v51 = vld [vmem:[%s4619_s8 + $0xc0] sm:$0xff]  }
  0x53   : > { %v4822_v59 = vld [vmem:[%s4619_s8 + $0xc8] ss:$0 sps:$4 sm:$0x11]  }
  0x54   : > { %3357 = vmatpush3.bf16.msra.mxu0 %v4158_v17  ;;  %3911 = vmatpush3.bf16.msra.mxu1 %v4598_v16  ;;  %v4760_v17 = vld [vmem:[%s4619_s8 + $0xa8] sm:$0xff]  }
  0x55   : > { %3358 = vmatprep.subr.bf16.mxu0 %v4159_v18  ;;  %3904 = vmatprep.subr.bf16.mxu1 %v4611_v19  ;;  %v543_v18 = vrot.slane %v541_v11, 1  ;;  %v779_v28 = vrot.slane %v4760_v17, 1  ;;  %v4204_v11 = vld [vmem:[%s5663_s1 + $0x38] sm:$0xff]  }
  0x57   : > { %v544_v31 = vor.u32 %v543_v18, %v539_v9  ;;  %v4854_v18 = vld [vmem:[%s4619_s8 + $0x44] ss:$0 sps:$4 sm:$0x11]  }
  0x58   : > { %3359 = vmatpush3.bf16.msra.mxu0 %v4161_v20  ;;  %3912 = vmatpush3.bf16.msra.mxu1 %v4611_v19  ;;  %v548_v20 = vrot.slane %v546_v12, 1  ;;  %v4851_v12 = vld [vmem:[%s4619_s8 + $0x3c] sm:$0xff]  }
  0x59   : > { %3360 = vmatprep.subr.bf16.mxu0 %v4162_v21  ;;  %3905 = vmatprep.subr.bf16.mxu1 %v4627_v22  ;;  %v776_v21 = vrot.slane %v4753_v14, 1 }
  0x5c   : > { %3361 = vmatpush3.bf16.msra.mxu0 %v4164_v25  ;;  %3913 = vmatpush3.bf16.msra.mxu1 %v4627_v22  ;;  %v777_v25 = vrot.slane %v4757_v15, 1 }
  0x5d   : > { %3754 = vmatprep.subr.bf16.mxu0 %v4532_v1  ;;  %3482 = vmatprep.subr.bf16.mxu1 %v4171_v36  ;;  %v4784_v36 = vsel %vm501_vm0, %v544_v31, %v548_v20  ;;  %v563_v20 = vshrl.u32 %v4851_v12, 16 }
  0x5e   : > { %v4777_v33 = vsel %vm736_vm1, %v776_v21, %v777_v25  ;;  %v565_v21 = vshll.u32 %v4851_v12, 16  ;;  %v4861_v25 = vld [vmem:[%s4619_s8] sm:$0xff]  }
  0x5f   : > { %1083 = vmatmul.mubr.bf16.vlgmr.msra.gmra.mrb[0].mxu0 %v4632_v23  ;;  %3787 = vmatmul.mubr.bf16.vlgmr.msra.gmra.mrb[0].mxu1 %v4681_v45 }
  0x60   : > { %3755 = vmatpush3.bf16.msra.mxu0 %v4532_v1  ;;  %3483 = vmatpush3.bf16.msra.mxu1 %v4172_v42  ;;  %v774_v1 = vrot.slane %v4714_v60, 1  ;;  %v551_v42 = vshrl.u32 %v4797_v39, 16  ;;  %v567_v31 = vrot.slane %v565_v21, 1 }
  0x61   : > { %3484 = vmatprep.subr.bf16.mxu1 %v4173_v44  ;;  %3756 = vmatprep.subr.bf16.mxu0 %v4545_v4  ;;  %v553_v44 = vshll.u32 %v4797_v39, 16 }
  0x62   : > { %3790 = vmatprep.mubr.bf16.mxu1 %v4723_v0  ;;  %1090 = vmatprep.mubr.bf16.mxu0 %v4730_v3 }
  0x63   : > { %v555_v55 = vrot.slane %v553_v44, 1  ;;  %v568_v44 = vor.u32 %v567_v31, %v563_v20  ;;  %v4214_v20 = vld [vmem:[%s5663_s1 + $0x88] sm:$0xff]  }
  0x64   : > { %3485 = vmatpush3.bf16.msra.mxu1 %v4174_v46  ;;  %3757 = vmatpush3.bf16.msra.mxu0 %v4545_v4  ;;  %v4735_v4 = vsel %vm736_vm1, %v773_v61, %v774_v1  ;;  %v558_v46 = vshll.u32 %v4800_v41, 16  ;;  %v785_v61 = vrot.slane %v4814_v51, 1 }
  0x65   : > { %3486 = vmatprep.subr.bf16.mxu1 %v4181_v58  ;;  %3758 = vmatprep.subr.bf16.mxu0 %v4557_v7  ;;  %v783_v58 = vrot.slane %v4811_v50, 1  ;;  %v556_v63 = vor.u32 %v555_v55, %v551_v42  ;;  %v4874_v42 = vld [vmem:[%s4619_s8 + $0x48] sm:$0xff]   ;;  %v4878_v55 = vld [vmem:[%s4619_s8 + $0x50] ss:$0 sps:$4 sm:$0x11]  }
  0x66   : > { %v560_v56 = vrot.slane %v558_v46, 1 }
  0x67   : > { %1091 = vmatmul.mubr.bf16.gmra.mrb[4].mxu0 %v4689_v47  ;;  %3791 = vmatmul.mubr.bf16.gmra.mrb[4].mxu1 %v4735_v4  ;;  %v4831_v1 = vsel %vm736_vm1, %v782_v57, %v783_v58  ;;  %v575_v57 = vshrl.u32 %v4874_v42, 16  ;;  %v4883_v58 = vld [vmem:[%s4619_s8 + $0x54] sm:$0xff]  }
  0x68   : > { %3487 = vmatpush3.bf16.msra.mxu1 %v4182_v62  ;;  %3759 = vmatpush3.bf16.msra.mxu0 %v4557_v7  ;;  %v4191_v7 = vld [vmem:[%s5663_s1 + $0x60] sm:$0xff]   ;;  %v4202_v62 = vld [vmem:[%s5663_s1 + $0x30] sm:$0xff]   ;;  %v4838_v9 = vsel %vm501_vm0, %v556_v63, %v560_v56  ;;  %v582_v63 = vshll.u32 %v4878_v55, 16 }
  0x69   : > { %3488 = vmatprep.subr.bf16.mxu1 %v4183_v2  ;;  %3760 = vmatprep.subr.bf16.mxu0 %v4570_v10  ;;  %v786_v2 = vrot.slane %v4822_v59, 1 }
  0x6a   : > { %3794 = vmatprep.mubr.bf16.mxu1 %v4777_v33  ;;  %1098 = vmatprep.mubr.bf16.mxu0 %v4784_v36 }
  0x6c   : > { %3489 = vmatpush3.bf16.msra.mxu1 %v4184_v5  ;;  %3761 = vmatpush3.bf16.msra.mxu0 %v4570_v10  ;;  %v4789_v10 = vsel %vm736_vm1, %v779_v28, %v780_v34  ;;  %v4203_v5 = vld [vmem:[%s5663_s1 + $0x78] sm:$0xff]   ;;  %v4865_v28 = vld [vmem:[%s4619_s8 + $0x8] ss:$0 sps:$4 sm:$0x11]   ;;  %v503_v34 = vshrl.u32 %v4861_v25, 16 }
  0x6d   : > { %3490 = vmatprep.subr.bf16.mxu1 %v4191_v7  ;;  %3762 = vmatprep.subr.bf16.mxu0 %v4584_v13  ;;  %v570_v7 = vshll.u32 %v4854_v18, 16 }
  0x6f   : > { %1099 = vmatmul.mubr.bf16.gmra.mrb[8].mxu0 %v4743_v6  ;;  %3795 = vmatmul.mubr.bf16.gmra.mrb[8].mxu1 %v4789_v10 }
  0x70   : > { %3491 = vmatpush3.bf16.msra.mxu1 %v4192_v29  ;;  %3763 = vmatpush3.bf16.msra.mxu0 %v4584_v13  ;;  %v4201_v13 = vld [vmem:[%s5663_s1 + $0x70] sm:$0xff]   ;;  %v4209_v29 = vld [vmem:[%s5663_s1 + $0x80] sm:$0xff]  }
  0x71   : > { %3492 = vmatprep.subr.bf16.mxu1 %v4193_v35  ;;  %3764 = vmatprep.subr.bf16.mxu0 %v4598_v16  ;;  %v505_v35 = vshll.u32 %v4861_v25, 16 }
  0x72   : > { %3798 = vmatprep.mubr.bf16.mxu1 %v4831_v1  ;;  %1106 = vmatprep.mubr.bf16.mxu0 %v4838_v9 }
  0x73   : > { %v507_v46 = vrot.slane %v505_v35, 1  ;;  %v4902_v35 = vld [vmem:[%s4619_s8 + $0x60] sm:$0xff]  }
  0x74   : > { %3493 = vmatpush3.bf16.msra.mxu1 %v4194_v38  ;;  %3765 = vmatpush3.bf16.msra.mxu0 %v4598_v16  ;;  %v4843_v16 = vsel %vm736_vm1, %v785_v61, %v786_v2  ;;  %v510_v38 = vshll.u32 %v4865_v28, 16  ;;  %v4890_v2 = vld [vmem:[%s4619_s8 + $0x5c] ss:$0 sps:$4 sm:$0x11]  }
  0x75   : > { %3494 = vmatprep.subr.bf16.mxu1 %v4201_v13  ;;  %3766 = vmatprep.subr.bf16.mxu0 %v4611_v19  ;;  %v577_v13 = vshll.u32 %v4874_v42, 16  ;;  %v594_v31 = vshll.u32 %v4890_v2, 16 }
  0x76   : > { %v512_v56 = vrot.slane %v510_v38, 1 }
  0x77   : > { %1107 = vmatmul.mubr.bf16.gmra.mrb[12].mxu0 %v4797_v39  ;;  %3799 = vmatmul.mubr.bf16.gmra.mrb[12].mxu1 %v4843_v16  ;;  %v596_v38 = vrot.slane %v594_v31, 1 }
  0x78   : > { %3495 = vmatpush3.bf16.msra.mxu1 %v4202_v62  ;;  %3767 = vmatpush3.bf16.msra.mxu0 %v4611_v19  ;;  %v572_v19 = vrot.slane %v570_v7, 1  ;;  %v508_v62 = vor.u32 %v507_v46, %v503_v34  ;;  %v584_v7 = vrot.slane %v582_v63, 1 }
  0x79   : > { %3496 = vmatprep.subr.bf16.mxu1 %v4203_v5  ;;  %3768 = vmatprep.subr.bf16.mxu0 %v4627_v22  ;;  %v587_v5 = vshrl.u32 %v4883_v58, 16 }
  0x7a   : > { %v4886_v61 = vsel %vm501_vm0, %v568_v44, %v572_v19  ;;  %v513_v21 = vsel %vm501_vm0, %v508_v62, %v512_v56  ;;  %v4906_v44 = vld [vmem:[%s4619_s8 + $0x68] ss:$0 sps:$4 sm:$0x11]  }
  0x7b   : > { %1114 = vmatprep.mubr.bf16.mxu0 %v4886_v61  ;;  %1548 = vmatprep.mubr.bf16.mxu1 %v513_v21 }
  0x7c   : > { %3497 = vmatpush3.bf16.msra.mxu1 %v4204_v11  ;;  %3769 = vmatpush3.bf16.msra.mxu0 %v4627_v22  ;;  %v579_v22 = vrot.slane %v577_v13, 1  ;;  %v589_v11 = vshll.u32 %v4883_v58, 16  ;;  %v601_v13 = vshll.u32 %v4902_v35, 16 }
  0x7d   : > { %3802 = vmatprep.subr.bf16.mxu1 %v4209_v29 }
  0x7e   : > { %v580_v19 = vor.u32 %v579_v22, %v575_v57  ;;  %v591_v34 = vrot.slane %v589_v11, 1  ;;  %v4217_v57 = vld [vmem:[%s5663_s1 + $0x90] sm:$0xff]   ;;  %v603_v63 = vrot.slane %v601_v13, 1  ;;  %v606_v22 = vshll.u32 %v4906_v44, 16 }
  0x7f   : > { %1115 = vmatmul.mubr.bf16.gmra.mrb[16].mxu0 %v4851_v12  ;;  %1549 = vmatmul.mubr.bf16.vlgmr.msra.gmra.mrb[16].mxu1 %v4861_v25  ;;  %v740_v13 = vrot.slane %v4632_v23, 1 }
  0x80   : > { %3803 = vmatpush3.bf16.msra.mxu1 %v4209_v29  ;;  %v4909_v46 = vsel %vm501_vm0, %v580_v19, %v584_v7  ;;  %1556 = vmatprep.mubr.bf16.mxu1 %v4672_v43  ;;  %v592_v56 = vor.u32 %v591_v34, %v587_v5  ;;  %v599_v29 = vshrl.u32 %v4902_v35, 16  ;;  %v4218_v43 = vld [vmem:[%s5663_s1 + $0x98] sm:$0xff]   ;;  %v4221_v5 = vld [vmem:[%s5663_s1 + $0x1c0] sm:$0xff]   ;;  %v608_v21 = vrot.slane %v606_v22, 1 }
  0x81   : > { %1122 = vmatprep.mubr.bf16.mxu0 %v4909_v46  ;;  %3804 = vmatprep.subr.bf16.mxu1 %v4214_v20  ;;  %v613_v7 = vshll.u32 %v4641_v26, 16  ;;  %v611_v19 = vshrl.u32 %v4641_v26, 16 }
  0x82   : > { %v4918_v62 = vsel %vm501_vm0, %v592_v56, %v596_v38  ;;  %v604_v11 = vor.u32 %v603_v63, %v599_v29  ;;  %3618 = vmatprep.subr.bf16.mxu0 %v4221_v5  ;;  %v618_v38 = vshll.u32 %v4647_v30, 16  ;;  %v4220_v56 = vld [vmem:[%s5663_s1 + $0xa8] sm:$0xff]   ;;  %v625_v30 = vshll.u32 %v4652_v32, 16 }
  0x83   : > { %v615_v34 = vrot.slane %v613_v7, 1 }
  0x84   : > { %3805 = vmatpush3.bf16.msra.mxu1 %v4214_v20  ;;  %v4219_v20 = vld [vmem:[%s5663_s1 + $0xa0] sm:$0xff]   ;;  %v4937_v31 = vsel %vm501_vm0, %v604_v11, %v608_v21  ;;  %v620_v63 = vrot.slane %v618_v38, 1  ;;  %v627_v5 = vrot.slane %v625_v30, 1  ;;  %v630_v11 = vshll.u32 %v4660_v37, 16  ;;  %v4232_v21 = vld [vmem:[%s5663_s1 + $0xb8] sm:$0xff]  }
  0x85   : > { %3806 = vmatprep.subr.bf16.mxu1 %v4217_v57  ;;  %v616_v29 = vor.u32 %v615_v34, %v611_v19  ;;  %v637_v19 = vshll.u32 %v4699_v52, 16  ;;  %v737_v37 = vrot.slane %v4861_v25, 1  ;;  %v738_v34 = vrot.slane %v4865_v28, 1  ;;  %v4984_v25 = vld [vmem:[%s5663_s1 + $0x200] sm:$0xff]  }
  0x86   : > { %v635_v38 = vshrl.u32 %v4699_v52, 16  ;;  %v647_v30 = vshrl.u32 %v4706_v54, 16 }
  0x87   : > { %1123 = vmatmul.mubr.bf16.gmra.mrb[20].mxu0 %v4874_v42  ;;  %1557 = vmatmul.mubr.bf16.gmra.mrb[20].mxu1 %v4632_v23  ;;  %v4223_v23 = vld [vmem:[%s5663_s1 + $0xb0] sm:$0xff]  }
  0x88   : > { %1130 = vmatprep.mubr.bf16.mxu0 %v4918_v62  ;;  %1564 = vmatprep.mubr.bf16.mxu1 %v4730_v3 }
  0x89   : > { %3807 = vmatpush3.bf16.msra.mxu1 %v4217_v57  ;;  %v741_v57 = vrot.slane %v4635_v24, 1  ;;  %v623_v24 = vshrl.u32 %v4652_v32, 16 }
  0x8a   : > { %3808 = vmatprep.subr.bf16.mxu1 %v4218_v43 }
  0x8b   : > { %v4951_v22 = vsel %vm736_vm1, %v740_v13, %v741_v57  ;;  %v628_v7 = vor.u32 %v627_v5, %v623_v24  ;;  %v639_v13 = vrot.slane %v637_v19, 1  ;;  %v642_v57 = vshll.u32 %v4703_v53, 16 }
  0x8c   : > { %v654_v24 = vshll.u32 %v4714_v60, 16  ;;  %v659_v60 = vshrl.u32 %v4753_v14, 16 }
  0x8d   : > { %3809 = vmatpush3.bf16.msra.mxu1 %v4218_v43  ;;  %v4959_v43 = vsel %vm501_vm0, %v616_v29, %v620_v63  ;;  %v4978_v29 = vsel %vm736_vm1, %v737_v37, %v738_v34  ;;  %v649_v63 = vshll.u32 %v4706_v54, 16  ;;  %v640_v53 = vor.u32 %v639_v13, %v635_v38 }
  0x8e   : > { %3810 = vmatprep.subr.bf16.mxu1 %v4219_v20  ;;  %v644_v28 = vrot.slane %v642_v57, 1  ;;  %v666_v37 = vshll.u32 %v4757_v15, 16  ;;  %v673_v13 = vshll.u32 %v4760_v17, 16  ;;  %v678_v15 = vshll.u32 %v4768_v27, 16 }
  0x8f   : > { %1131 = vmatmul.mubr.bf16.gmra.mrb[24].mxu0 %v4883_v58  ;;  %1565 = vmatmul.mubr.bf16.gmra.mrb[24].mxu1 %v4689_v47  ;;  %v690_v27 = vshll.u32 %v4811_v50, 16  ;;  %v702_v50 = vshll.u32 %v4822_v59, 16  ;;  %v744_v59 = vrot.slane %v4692_v48, 1 }
  0x90   : > { %1138 = vmatprep.mubr.bf16.mxu0 %v4937_v31  ;;  %1572 = vmatprep.mubr.bf16.mxu1 %v4784_v36  ;;  %v4994_v5 = vsel %vm501_vm0, %v640_v53, %v644_v28  ;;  %v668_v38 = vrot.slane %v666_v37, 1  ;;  %v675_v53 = vrot.slane %v673_v13, 1 }
  0x91   : > { %3811 = vmatpush3.bf16.msra.mxu1 %v4219_v20  ;;  %v632_v20 = vrot.slane %v630_v11, 1 }
  0x92   : > { %3812 = vmatprep.subr.bf16.mxu1 %v4220_v56 }
  0x95   : > { %3813 = vmatpush3.bf16.msra.mxu1 %v4220_v56  ;;  %v4974_v56 = vsel %vm501_vm0, %v628_v7, %v632_v20  ;;  %v661_v7 = vshll.u32 %v4753_v14, 16 }
  0x96   : > { %3814 = vmatprep.subr.bf16.mxu1 %v4223_v23 }
  0x97   : > { %1139 = vmatmul.mubr.bf16.gmra.mrb[28].mxu0 %v4902_v35  ;;  %1573 = vmatmul.mubr.bf16.gmra.mrb[28].mxu1 %v4743_v6  ;;  %v663_v19 = vrot.slane %v661_v7, 1 }
  0x98   : > { %1146 = vmatprep.mubr.bf16.mxu0 %v4959_v43  ;;  %1580 = vmatprep.mubr.bf16.mxu1 %v4838_v9 }
  0x99   : > { %3815 = vmatpush3.bf16.msra.mxu1 %v4223_v23  ;;  %v651_v23 = vrot.slane %v649_v63, 1  ;;  %v664_v34 = vor.u32 %v663_v19, %v659_v60  ;;  %v671_v63 = vshrl.u32 %v4760_v17, 16  ;;  %v692_v60 = vrot.slane %v690_v27, 1 }
  0x9a   : > { %3816 = vmatprep.subr.bf16.mxu1 %v4232_v21  ;;  %v697_v19 = vshll.u32 %v4814_v51, 16  ;;  %v753_v27 = vrot.slane %v4854_v18, 1  ;;  %v4229_v18 = vld [vmem:[%s5663_s1 + $0x198] sm:$0xff]  }
  0x9b   : > { %v652_v11 = vor.u32 %v651_v23, %v647_v30  ;;  %v5012_v57 = vsel %vm501_vm0, %v664_v34, %v668_v38  ;;  %v676_v28 = vor.u32 %v675_v53, %v671_v63  ;;  %v680_v30 = vrot.slane %v678_v15, 1 }
  0x9c   : > { %v685_v23 = vshll.u32 %v4807_v49, 16  ;;  %v695_v34 = vshrl.u32 %v4814_v51, 16  ;;  %v699_v38 = vrot.slane %v697_v19, 1  ;;  %v704_v63 = vrot.slane %v702_v50, 1 }
  0x9d   : > { %3817 = vmatpush3.bf16.msra.mxu1 %v4232_v21  ;;  %v656_v21 = vrot.slane %v654_v24, 1  ;;  %v5022_v24 = vsel %vm501_vm0, %v676_v28, %v680_v30  ;;  %v746_v15 = vrot.slane %v4743_v6, 1  ;;  %v747_v28 = vrot.slane %v4746_v8, 1  ;;  %v4224_v30 = vld [vmem:[%s5663_s1 + $0x1c8] sm:$0xff]  }
  0x9e   : > { %3850 = vmatprep.subr.bf16.mxu1 %v4984_v25  ;;  %v700_v13 = vor.u32 %v699_v38, %v695_v34  ;;  %v749_v8 = vrot.slane %v4797_v39, 1  ;;  %v755_v19 = vrot.slane %v4874_v42, 1  ;;  %v756_v34 = vrot.slane %v4878_v55, 1  ;;  %v4230_v38 = vld [vmem:[%s5663_s1 + $0x1e0] sm:$0xff]  }
  0x9f   : > { %1147 = vmatmul.mubr.bf16.gmra.mrb[32].mxu0 %v4641_v26  ;;  %1581 = vmatmul.mubr.bf16.gmra.mrb[32].mxu1 %v4797_v39  ;;  %v5002_v20 = vsel %vm501_vm0, %v652_v11, %v656_v21  ;;  %v683_v11 = vshrl.u32 %v4807_v49, 16  ;;  %v687_v21 = vrot.slane %v685_v23, 1  ;;  %v5065_v48 = vsel %vm736_vm1, %v746_v15, %v747_v28  ;;  %v4231_v55 = vld [vmem:[%s5663_s1 + $0x1a0] sm:$0xff]   ;;  %v4235_v28 = vld [vmem:[%s5663_s1 + $0x1f0] sm:$0xff]  }
  0xa0   : > { %1154 = vmatprep.mubr.bf16.mxu0 %v4974_v56  ;;  %1588 = vmatprep.mubr.bf16.mxu1 %v4886_v61  ;;  %v5041_v53 = vsel %vm501_vm0, %v700_v13, %v704_v63  ;;  %v750_v23 = vrot.slane %v4800_v41, 1  ;;  %v4227_v41 = vld [vmem:[%s5663_s1 + $0x190] sm:$0xff]   ;;  %v758_v50 = vrot.slane %v4883_v58, 1  ;;  %v759_v13 = vrot.slane %v4890_v2, 1  ;;  %v4234_v2 = vld [vmem:[%s5663_s1 + $0x1a8] sm:$0xff]  }
  0xa1   : > { %v688_v7 = vor.u32 %v687_v21, %v683_v11  ;;  %v4226_v11 = vld [vmem:[%s5663_s1 + $0x1d0] sm:$0xff]   ;;  %v752_v21 = vrot.slane %v4851_v12, 1  ;;  %v5108_v63 = vsel %vm736_vm1, %v755_v19, %v756_v34  ;;  %v762_v15 = vrot.slane %v4906_v44, 1  ;;  %v4238_v44 = vld [vmem:[%s5663_s1 + $0x1b8] sm:$0xff]  }
  0xa3   : > { %v5032_v37 = vsel %vm501_vm0, %v688_v7, %v692_v60  ;;  %v5082_v7 = vsel %vm736_vm1, %v749_v8, %v750_v23  ;;  %v5091_v60 = vsel %vm736_vm1, %v752_v21, %v753_v27 }
  0xa7   : > { %1155 = vmatmul.mubr.bf16.gmra.mrb[36].mxu0 %v4652_v32  ;;  %1589 = vmatmul.mubr.bf16.gmra.mrb[36].mxu1 %v4851_v12 }
  0xa8   : > { %1162 = vmatprep.mubr.bf16.mxu0 %v4994_v5  ;;  %1596 = vmatprep.mubr.bf16.mxu1 %v4909_v46 }
  0xaf   : > { %1163 = vmatmul.mubr.bf16.gmra.mrb[40].mxu0 %v4699_v52  ;;  %1597 = vmatmul.mubr.bf16.gmra.mrb[40].mxu1 %v4874_v42 }
  0xb0   : > { %1170 = vmatprep.mubr.bf16.mxu0 %v5002_v20  ;;  %1604 = vmatprep.mubr.bf16.mxu1 %v4918_v62 }
  0xb7   : > { %1171 = vmatmul.mubr.bf16.gmra.mrb[44].mxu0 %v4706_v54  ;;  %1605 = vmatmul.mubr.bf16.gmra.mrb[44].mxu1 %v4883_v58 }
  0xb8   : > { %1178 = vmatprep.mubr.bf16.mxu0 %v5012_v57  ;;  %1612 = vmatprep.mubr.bf16.mxu1 %v4937_v31 }
  0xbf   : > { %1179 = vmatmul.mubr.bf16.gmra.mrb[48].mxu0 %v4753_v14  ;;  %1613 = vmatmul.mubr.bf16.gmra.mrb[48].mxu1 %v4902_v35 }
  0xc0   : > { %1186 = vmatprep.mubr.bf16.mxu0 %v5022_v24  ;;  %1620 = vmatprep.mubr.bf16.mxu1 %v4959_v43 }
  0xc7   : > { %1187 = vmatmul.mubr.bf16.gmra.mrb[52].mxu0 %v4760_v17  ;;  %1621 = vmatmul.mubr.bf16.gmra.mrb[52].mxu1 %v4641_v26  ;;  %v743_v26 = vrot.slane %v4689_v47, 1 }
  0xc8   : > { %1194 = vmatprep.mubr.bf16.mxu0 %v5032_v37  ;;  %1628 = vmatprep.mubr.bf16.mxu1 %v4974_v56 }
  0xcf   : > { %1195 = vmatmul.mubr.bf16.gmra.mrb[56].mxu0 %v4807_v49  ;;  %1629 = vmatmul.mubr.bf16.gmra.mrb[56].mxu1 %v4652_v32  ;;  %v5056_v32 = vsel %vm736_vm1, %v743_v26, %v744_v59  ;;  %v5117_v26 = vsel %vm736_vm1, %v758_v50, %v759_v13  ;;  %v761_v59 = vrot.slane %v4902_v35, 1 }
  0xd0   : > { %1202 = vmatprep.mubr.bf16.mxu0 %v5041_v53  ;;  %1636 = vmatprep.mubr.bf16.mxu1 %v4994_v5 }
  0xd7   : > { %1203 = vmatmul.mubr.bf16.gmra.mrb[60].mxu0 %v4814_v51  ;;  %1637 = vmatmul.mubr.bf16.gmra.mrb[60].mxu1 %v4699_v52  ;;  %v4222_v51 = vld [vmem:[%s5663_s1 + $0x180] sm:$0xff]   ;;  %v4225_v52 = vld [vmem:[%s5663_s1 + $0x188] sm:$0xff]  }
  0xd8   : > { %3770 = vmatprep.mubr.bf16.mxu0 %v4951_v22  ;;  %1644 = vmatprep.mubr.bf16.mxu1 %v5002_v20 }
  0xdf   : > { %3771 = vmatmul.mubr.bf16.vlgmr.msra.gmra.mrb[64].mxu0 %v5056_v32  ;;  %1645 = vmatmul.mubr.bf16.gmra.mrb[64].mxu1 %v4706_v54  ;;  %v4228_v54 = vld [vmem:[%s5663_s1 + $0x1d8] sm:$0xff]  }
  0xe0   : > { %3619 = vmatpush3.bf16.msra.mxu0 %v4222_v51  ;;  %3774 = vmatprep.mubr.bf16.mxu0 %v5065_v48  ;;  %v5132_v51 = vsel %vm736_vm1, %v761_v59, %v762_v15 }
  0xe1   : > { %3620 = vmatprep.subr.bf16.mxu0 %v4224_v30  ;;  %1652 = vmatprep.mubr.bf16.mxu1 %v5012_v57  ;;  %v4236_v30 = vld [vmem:[%s5663_s1 + $0x1b0] sm:$0xff]  }
  0xe4   : > { %3621 = vmatpush3.bf16.msra.mxu0 %v4225_v52  ;;  %v4240_v52 = vld [vmem:[%s5663_s1 + $0x208] sm:$0xff]  }
  0xe5   : > { %3622 = vmatprep.subr.bf16.mxu0 %v4226_v11 }
  0xe7   : > { %3775 = vmatmul.mubr.bf16.gmra.mrb[68].mxu0 %v5082_v7  ;;  %1653 = vmatmul.mubr.bf16.gmra.mrb[68].mxu1 %v4753_v14  ;;  %v4233_v14 = vld [vmem:[%s5663_s1 + $0x1e8] sm:$0xff]  }
  0xe8   : > { %3623 = vmatpush3.bf16.msra.mxu0 %v4227_v41  ;;  %3778 = vmatprep.mubr.bf16.mxu0 %v5091_v60 }
  0xe9   : > { %3624 = vmatprep.subr.bf16.mxu0 %v4228_v54  ;;  %1660 = vmatprep.mubr.bf16.mxu1 %v5022_v24 }
  0xec   : > { %3625 = vmatpush3.bf16.msra.mxu0 %v4229_v18 }
  0xed   : > { %3626 = vmatprep.subr.bf16.mxu0 %v4230_v38  ;;  %v4252_v38 = vld [vmem:[%s4619_s8 + $0x90] sm:$0xff]  }
  0xef   : > { %3779 = vmatmul.mubr.bf16.gmra.mrb[72].mxu0 %v5108_v63  ;;  %1661 = vmatmul.mubr.bf16.gmra.mrb[72].mxu1 %v4760_v17  ;;  %v4237_v17 = vld [vmem:[%s5663_s1 + $0x1f8] sm:$0xff]  }
  0xf0   : > { %3627 = vmatpush3.bf16.msra.mxu0 %v4231_v55  ;;  %3782 = vmatprep.mubr.bf16.mxu0 %v5117_v26 }
  0xf1   : > { %3628 = vmatprep.subr.bf16.mxu0 %v4233_v14  ;;  %1668 = vmatprep.mubr.bf16.mxu1 %v5032_v37 }
  0xf4   : > { %3629 = vmatpush3.bf16.msra.mxu0 %v4234_v2 }
  0xf5   : > { %3630 = vmatprep.subr.bf16.mxu0 %v4235_v28 }
  0xf7   : > { %3783 = vmatmul.mubr.bf16.gmra.mrb[76].mxu0 %v5132_v51  ;;  %1669 = vmatmul.mubr.bf16.gmra.mrb[76].mxu1 %v4807_v49  ;;  %v4245_v49 = vld [vmem:[%s5663_s1 + $0x230] sm:$0xff]  }
  0xf8   : > { %3631 = vmatpush3.bf16.msra.mxu0 %v4236_v30  ;;  %2063 = vmatprep.mubr.bf16.mxu0 %v4730_v3  ;;  %v4241_v3 = vld [vmem:[%s5663_s1 + $0x210] sm:$0xff]  }
  0xf9   : > { %3632 = vmatprep.subr.bf16.mxu0 %v4237_v17  ;;  %3818 = vmatprep.mubr.bf16.mxu1 %v4978_v29 }
  0xfc   : > { %3633 = vmatpush3.bf16.msra.mxu0 %v4238_v44 }
  0xff   : > { %2064 = vmatmul.mubr.bf16.vlgmr.msra.gmra.mrb[80].mxu0 %v4689_v47  ;;  %3819 = vmatmul.mubr.bf16.vlgmr.msra.gmra.mrb[80].mxu1 %v4951_v22  ;;  %v4242_v47 = vld [vmem:[%s5663_s1 + $0x218] sm:$0xff]  }
 0x100   : > { %2071 = vmatprep.mubr.bf16.mxu0 %v4784_v36  ;;  %3851 = vmatpush3.bf16.msra.mxu1 %v4984_v25  ;;  %v4243_v36 = vld [vmem:[%s5663_s1 + $0x220] sm:$0xff]   ;;  %v4249_v25 = vld [vmem:[%s4619_s8 + $0x6c] sm:$0xff]  }
 0x101   : > { %3822 = vmatprep.mubr.bf16.mxu1 %v5056_v32  ;;  %3852 = vmatprep.subr.bf16.mxu1 %v4240_v52 }
 0x104   : > { %3853 = vmatpush3.bf16.msra.mxu1 %v4240_v52 }
 0x105   : > { %3854 = vmatprep.subr.bf16.mxu1 %v4241_v3 }
 0x107   : > { %2072 = vmatmul.mubr.bf16.gmra.mrb[84].mxu0 %v4743_v6  ;;  %3823 = vmatmul.mubr.bf16.gmra.mrb[84].mxu1 %v5065_v48  ;;  %v4244_v6 = vld [vmem:[%s5663_s1 + $0x228] sm:$0xff]  }
 0x108   : > { %2079 = vmatprep.mubr.bf16.mxu0 %v4838_v9  ;;  %3826 = vmatprep.mubr.bf16.mxu1 %v5082_v7 }
 0x109   : > { %3855 = vmatpush3.bf16.msra.mxu1 %v4241_v3 }
 0x10a   : > { %3856 = vmatprep.subr.bf16.mxu1 %v4242_v47 }
 0x10d   : > { %3857 = vmatpush3.bf16.msra.mxu1 %v4242_v47  ;;  %v5244_v47 = vld [vmem:[%s4619_s8 + $0xcc] sm:$0xff]  }
 0x10e   : > { %3858 = vmatprep.subr.bf16.mxu1 %v4243_v36 }
 0x10f   : > { %2080 = vmatmul.mubr.bf16.gmra.mrb[88].mxu0 %v4797_v39  ;;  %3827 = vmatmul.mubr.bf16.gmra.mrb[88].mxu1 %v5091_v60  ;;  %v4246_v39 = vld [vmem:[%s5663_s1 + $0x238] sm:$0xff]  }
 0x110   : > { %2087 = vmatprep.mubr.bf16.mxu0 %v4886_v61  ;;  %3830 = vmatprep.mubr.bf16.mxu1 %v5108_v63 }
 0x111   : > { %3859 = vmatpush3.bf16.msra.mxu1 %v4243_v36 }
 0x112   : > { %3860 = vmatprep.subr.bf16.mxu1 %v4244_v6 }
 0x115   : > { %3861 = vmatpush3.bf16.msra.mxu1 %v4244_v6 }
 0x116   : > { %3862 = vmatprep.subr.bf16.mxu1 %v4245_v49 }
 0x117   : > { %2088 = vmatmul.mubr.bf16.gmra.mrb[92].mxu0 %v4851_v12  ;;  %3831 = vmatmul.mubr.bf16.gmra.mrb[92].mxu1 %v5117_v26 }
 0x118   : > { %2095 = vmatprep.mubr.bf16.mxu0 %v4909_v46  ;;  %3834 = vmatprep.mubr.bf16.mxu1 %v5132_v51 }
 0x119   : > { %3863 = vmatpush3.bf16.msra.mxu1 %v4245_v49 }
 0x11a   : > { %3864 = vmatprep.subr.bf16.mxu1 %v4246_v39 }
 0x11d   : > { %3865 = vmatpush3.bf16.msra.mxu1 %v4246_v39 }
 0x11f   : > { %2096 = vmatmul.mubr.bf16.gmra.mrb[96].mxu0 %v4874_v42  ;;  %3835 = vmatmul.mubr.bf16.gmra.mrb[0].mxu1 %v4664_v40 }
 0x120   : > { %2103 = vmatprep.mubr.bf16.mxu0 %v4918_v62  ;;  %3838 = vmatprep.mubr.bf16.mxu1 %v4681_v45 }
 0x127   : > { %2104 = vmatmul.mubr.bf16.gmra.mrb[100].mxu0 %v4883_v58  ;;  %3839 = vmatmul.mubr.bf16.gmra.mrb[4].mxu1 %v4723_v0 }
 0x128   : > { %2111 = vmatprep.mubr.bf16.mxu0 %v4937_v31  ;;  %3842 = vmatprep.mubr.bf16.mxu1 %v4735_v4 }
 0x12f   : > { %2112 = vmatmul.mubr.bf16.gmra.mrb[104].mxu0 %v4902_v35  ;;  %3843 = vmatmul.mubr.bf16.gmra.mrb[8].mxu1 %v4777_v33 }
 0x130   : > { %2119 = vmatprep.mubr.bf16.mxu0 %v4959_v43  ;;  %3846 = vmatprep.mubr.bf16.mxu1 %v4789_v10  ;;  %v4250_v43 = vld [vmem:[%s4619_s8 + $0x78] sm:$0xff]  }
 0x132   : > { %v3362_v9 = vpop.f32.mrb[0].mxu0 }
 0x133   : > { %v3363_v12 = vpop.f32.mrb[1].mxu0 }
 0x134   : > { %v5193_v61 = vadd.f32 %v3363_v12, %v3362_v9  ;;  %v3365_v42 = vpop.f32.mrb[2].mxu0  ;;  %v709_v9 = vshll.u32 %v5244_v47, 16 }
 0x135   : > { %v3366_v46 = vpop.f32.mrb[3].mxu0 }
 0x136   : > { %v5195_v62 = vadd.f32 %v3366_v46, %v3365_v42 }
 0x137   : > { %2120 = vmatmul.mubr.bf16.gmra.mrb[108].mxu0 %v4249_v25  ;;  %3847 = vmatmul.mubr.bf16.gmra.mrb[12].mxu1 %v4831_v1 }
 0x138   : > { %2127 = vmatprep.mubr.bf16.mxu0 %v4974_v56  ;;  %3866 = vmatprep.mubr.bf16.mxu1 %v5056_v32  ;;  %v4251_v56 = vld [vmem:[%s4619_s8 + $0x84] sm:$0xff]  }
 0x13a   : > { %v3368_v58 = vpop.f32.mrb[4].mxu0 }
 0x13b   : > { %v3369_v31 = vpop.f32.mrb[5].mxu0 }
 0x13c   : > { %v5201_v22 = vadd.f32 %v3369_v31, %v3368_v58  ;;  %v3371_v29 = vpop.f32.mrb[6].mxu0 }
 0x13d   : > { %v3372_v8 = vpop.f32.mrb[7].mxu0 }
 0x13e   : > { %v5204_v23 = vadd.f32 %v3372_v8, %v3371_v29  ;;  %v707_v8 = vshrl.u32 %v5244_v47, 16 }
 0x13f   : > { %2128 = vmatmul.mubr.bf16.gmra.mrb[112].mxu0 %v4250_v43  ;;  %3867 = vmatmul.mubr.bf16.vlgmr.msra.gmra.mrb[80].mxu1 %v5065_v48 }
 0x140   : > { %2135 = vmatprep.mubr.bf16.mxu0 %v4994_v5  ;;  %3870 = vmatprep.mubr.bf16.mxu1 %v5082_v7 }
 0x142   : > { %v3374_v35 = vpop.f32.mrb[8].mxu0 }
 0x143   : > { %v3375_v11 = vpop.f32.mrb[9].mxu0 }
 0x144   : > { %v5210_v21 = vadd.f32 %v3375_v11, %v3374_v35  ;;  %v3377_v27 = vpop.f32.mrb[10].mxu0  ;;  %v711_v35 = vrot.slane %v709_v9, 1 }
 0x145   : > { %v3378_v41 = vpop.f32.mrb[11].mxu0 }
 0x146   : > { %v5214_v54 = vadd.f32 %v3378_v41, %v3377_v27  ;;  %v4255_v41 = vld [vmem:[%s4619_s8 + $0xb4] sm:$0xff]  }
 0x147   : > { %2136 = vmatmul.mubr.bf16.gmra.mrb[116].mxu0 %v4251_v56  ;;  %3871 = vmatmul.mubr.bf16.gmra.mrb[84].mxu1 %v5091_v60  ;;  %v712_v56 = vor.u32 %v711_v35, %v707_v8 }
 0x148   : > { %2143 = vmatprep.mubr.bf16.mxu0 %v5002_v20  ;;  %3874 = vmatprep.mubr.bf16.mxu1 %v5108_v63 }
 0x14a   : > { %v3380_v32 = vpop.f32.mrb[12].mxu0 }
 0x14b   : > { %v3381_v18 = vpop.f32.mrb[13].mxu0 }
 0x14c   : > { %v5220_v19 = vadd.f32 %v3381_v18, %v3380_v32  ;;  %v3383_v34 = vpop.f32.mrb[14].mxu0 }
 0x14d   : > { %v3384_v5 = vpop.f32.mrb[15].mxu0 }
 0x14e   : > { %v5223_v48 = vadd.f32 %v3384_v5, %v3383_v34 }
 0x14f   : > { %2144 = vmatmul.mubr.bf16.gmra.mrb[120].mxu0 %v4252_v38  ;;  %3875 = vmatmul.mubr.bf16.gmra.mrb[88].mxu1 %v5117_v26 }
 0x150   : > { %2151 = vmatprep.mubr.bf16.mxu0 %v5012_v57  ;;  %3878 = vmatprep.mubr.bf16.mxu1 %v5132_v51  ;;  %v4253_v57 = vld [vmem:[%s4619_s8 + $0x9c] sm:$0xff]  }
 0x152   : > { %v3386_v7 = vpop.f32.mrb[16].mxu0  ;;  %v3498_v13 = vpop.f32.mrb[16].mxu1 }
 0x153   : > { %v3387_v20 = vpop.f32.mrb[17].mxu0  ;;  %v3499_v63 = vpop.f32.mrb[17].mxu1 }
 0x154   : > { %v5229_v60 = vadd.f32 %v3387_v20, %v3386_v7  ;;  %v3389_v50 = vpop.f32.mrb[18].mxu0  ;;  %v5233_v2 = vadd.f32 %v3499_v63, %v3498_v13  ;;  %v3501_v59 = vpop.f32.mrb[18].mxu1 }
 0x155   : > { %v3390_v55 = vpop.f32.mrb[19].mxu0  ;;  %v3502_v15 = vpop.f32.mrb[19].mxu1 }
 0x156   : > { %v5231_v14 = vadd.f32 %v3390_v55, %v3389_v50  ;;  %v5236_v26 = vadd.f32 %v3502_v15, %v3501_v59  ;;  %v4256_v59 = vld [vmem:[%s4619_s8 + $0xc0] sm:$0xff]  }
 0x157   : > { %2152 = vmatmul.mubr.bf16.gmra.mrb[124].mxu0 %v4253_v57  ;;  %3879 = vmatmul.mubr.bf16.gmra.mrb[92].mxu1 %v4664_v40  ;;  %v4254_v40 = vld [vmem:[%s4619_s8 + $0xa8] sm:$0xff]   ;;  %v788_v57 = vrot.slane %v5244_v47, 1 }
 0x158   : > { %2159 = vmatprep.mubr.bf16.mxu0 %v5022_v24  ;;  %3882 = vmatprep.mubr.bf16.mxu1 %v4681_v45  ;;  %v4248_v45 = vld [vmem:[%s4619_s8 + $0xd4] ss:$0 sps:$4 sm:$0x11]  }
 0x15a   : > { %v3392_v28 = vpop.f32.mrb[20].mxu0  ;;  %v3504_v44 = vpop.f32.mrb[20].mxu1 }
 0x15b   : > { %v3393_v51 = vpop.f32.mrb[21].mxu0  ;;  %v3505_v3 = vpop.f32.mrb[21].mxu1 }
 0x15c   : > { %v5241_v30 = vadd.f32 %v3393_v51, %v3392_v28  ;;  %v3395_v17 = vpop.f32.mrb[22].mxu0  ;;  %v5248_v6 = vadd.f32 %v3505_v3, %v3504_v44  ;;  %v3507_v24 = vpop.f32.mrb[22].mxu1  ;;  %v789_v28 = vrot.slane %v4248_v45, 1 }
 0x15d   : > { %v3396_v52 = vpop.f32.mrb[23].mxu0  ;;  %v3508_v49 = vpop.f32.mrb[23].mxu1 }
 0x15e   : > { %v5246_v36 = vadd.f32 %v3396_v52, %v3395_v17  ;;  %v5251_v39 = vadd.f32 %v3508_v49, %v3507_v24 }
 0x15f   : > { %2160 = vmatmul.mubr.bf16.gmra.mrb[128].mxu0 %v4254_v40  ;;  %3883 = vmatmul.mubr.bf16.gmra.mrb[0].mxu1 %v4723_v0 }
 0x160   : > { %2167 = vmatprep.mubr.bf16.mxu0 %v5032_v37  ;;  %3886 = vmatprep.mubr.bf16.mxu1 %v4735_v4  ;;  %v714_v37 = vshll.u32 %v4248_v45, 16 }
 0x162   : > { %v3398_v12 = vpop.f32.mrb[24].mxu0  ;;  %v3510_v31 = vpop.f32.mrb[24].mxu1  ;;  %v716_v32 = vrot.slane %v714_v37, 1 }
 0x163   : > { %v3399_v42 = vpop.f32.mrb[25].mxu0  ;;  %v3511_v25 = vpop.f32.mrb[25].mxu1 }
 0x164   : > { %v5258_v46 = vadd.f32 %v3399_v42, %v3398_v12  ;;  %v3401_v58 = vpop.f32.mrb[26].mxu0  ;;  %v5263_v0 = vadd.f32 %v3511_v25, %v3510_v31  ;;  %v3513_v11 = vpop.f32.mrb[26].mxu1  ;;  %v717_v13 = vsel %vm501_vm0, %v712_v56, %v716_v32  ;;  %v790_v12 = vsel %vm736_vm1, %v788_v57, %v789_v28 }
 0x165   : > { %v3402_v29 = vpop.f32.mrb[27].mxu0  ;;  %v3514_v27 = vpop.f32.mrb[27].mxu1 }
 0x166   : > { %v5261_v43 = vadd.f32 %v3402_v29, %v3401_v58  ;;  %v5266_v4 = vadd.f32 %v3514_v27, %v3513_v11 }
 0x167   : > { %2168 = vmatmul.mubr.bf16.gmra.mrb[132].mxu0 %v4255_v41  ;;  %3887 = vmatmul.mubr.bf16.gmra.mrb[4].mxu1 %v4777_v33 }
 0x168   : > { %2175 = vmatprep.mubr.bf16.mxu0 %v5041_v53  ;;  %3890 = vmatprep.mubr.bf16.mxu1 %v4789_v10 }
 0x16a   : > { %v3404_v18 = vpop.f32.mrb[28].mxu0  ;;  %v3516_v7 = vpop.f32.mrb[28].mxu1 }
 0x16b   : > { %v3405_v34 = vpop.f32.mrb[29].mxu0  ;;  %v3517_v50 = vpop.f32.mrb[29].mxu1 }
 0x16c   : > { %v5271_v5 = vadd.f32 %v3405_v34, %v3404_v18  ;;  %v3407_v38 = vpop.f32.mrb[30].mxu0  ;;  %v5276_v53 = vadd.f32 %v3517_v50, %v3516_v7  ;;  %v3519_v33 = vpop.f32.mrb[30].mxu1 }
 0x16d   : > { %v3408_v20 = vpop.f32.mrb[31].mxu0  ;;  %v3520_v63 = vpop.f32.mrb[31].mxu1 }
 0x16e   : > { %v5274_v55 = vadd.f32 %v3408_v20, %v3407_v38  ;;  %v5279_v15 = vadd.f32 %v3520_v63, %v3519_v33 }
 0x16f   : > { %2176 = vmatmul.mubr.bf16.gmra.mrb[136].mxu0 %v4256_v59  ;;  %3891 = vmatmul.mubr.bf16.gmra.mrb[8].mxu1 %v4831_v1 }
 0x170   : > { %2183 = vmatprep.mubr.bf16.mxu0 %v717_v13  ;;  %3894 = vmatprep.mubr.bf16.mxu1 %v4843_v16 }
 0x172   : > { %v3410_v10 = vpop.f32.mrb[32].mxu0  ;;  %v3522_v52 = vpop.f32.mrb[32].mxu1 }
 0x173   : > { %v3411_v51 = vpop.f32.mrb[33].mxu0  ;;  %v3523_v24 = vpop.f32.mrb[33].mxu1 }
 0x174   : > { %v3412_v17 = vadd.f32 %v3411_v51, %v3410_v10  ;;  %v3413_v44 = vpop.f32.mrb[34].mxu0  ;;  %v5284_v40 = vadd.f32 %v3523_v24, %v3522_v52  ;;  %v3525_v9 = vpop.f32.mrb[34].mxu1 }
 0x175   : > { %v3414_v3 = vpop.f32.mrb[35].mxu0  ;;  %v3526_v42 = vpop.f32.mrb[35].mxu1 }
 0x176   : > { %v3415_v49 = vadd.f32 %v3414_v3, %v3413_v44  ;;  %v5288_v1 = vadd.f32 %v3526_v42, %v3525_v9 }
 0x177   : > { %2184 = vmatmul.mubr.bf16.gmra.mrb[140].mxu0 %v5244_v47  ;;  %3895 = vmatmul.mubr.bf16.gmra.mrb[12].mxu1 %v790_v12 }
 0x17a   : > { %v3416_v16 = vpop.f32.mrb[36].mxu0  ;;  %v3528_v29 = vpop.f32.mrb[36].mxu1 }
 0x17b   : > { %v3417_v45 = vpop.f32.mrb[37].mxu0  ;;  %v3529_v8 = vpop.f32.mrb[37].mxu1 }
 0x17c   : > { %v3418_v58 = vadd.f32 %v3417_v45, %v3416_v16  ;;  %v3419_v31 = vpop.f32.mrb[38].mxu0  ;;  %v5290_v37 = vadd.f32 %v3529_v8, %v3528_v29  ;;  %v3531_v11 = vpop.f32.mrb[38].mxu1 }
 0x17d   : > { %v3420_v25 = vpop.f32.mrb[39].mxu0  ;;  %v3532_v27 = vpop.f32.mrb[39].mxu1 }
 0x17e   : > { %v3421_v35 = vadd.f32 %v3420_v25, %v3419_v31  ;;  %v5292_v41 = vadd.f32 %v3532_v27, %v3531_v11 }
 0x182   : > { %v3422_v56 = vpop.f32.mrb[40].mxu0  ;;  %v3534_v34 = vpop.f32.mrb[40].mxu1 }
 0x183   : > { %v3423_v32 = vpop.f32.mrb[41].mxu0  ;;  %v3535_v7 = vpop.f32.mrb[41].mxu1 }
 0x184   : > { %v3424_v47 = vadd.f32 %v3423_v32, %v3422_v56  ;;  %v3425_v18 = vpop.f32.mrb[42].mxu0  ;;  %v5294_v50 = vadd.f32 %v3535_v7, %v3534_v34  ;;  %v3537_v13 = vpop.f32.mrb[42].mxu1 }
 0x185   : > { %v3426_v38 = vpop.f32.mrb[43].mxu0  ;;  %v3538_v33 = vpop.f32.mrb[43].mxu1 }
 0x186   : > { %v3427_v20 = vadd.f32 %v3426_v38, %v3425_v18  ;;  %v5296_v63 = vadd.f32 %v3538_v33, %v3537_v13 }
 0x18a   : > { %v3428_v59 = vpop.f32.mrb[44].mxu0  ;;  %v3540_v51 = vpop.f32.mrb[44].mxu1 }
 0x18b   : > { %v3429_v10 = vpop.f32.mrb[45].mxu0  ;;  %v3541_v52 = vpop.f32.mrb[45].mxu1 }
 0x18c   : > { %v5298_v57 = vadd.f32 %v3429_v10, %v3428_v59  ;;  %v3431_v28 = vpop.f32.mrb[46].mxu0  ;;  %v5300_v24 = vadd.f32 %v3541_v52, %v3540_v51  ;;  %v3543_v9 = vpop.f32.mrb[46].mxu1 }
 0x18d   : > { %v3432_v44 = vpop.f32.mrb[47].mxu0  ;;  %v3544_v12 = vpop.f32.mrb[47].mxu1 }
 0x18e   : > { %v3433_v3 = vadd.f32 %v3432_v44, %v3431_v28  ;;  %v5302_v42 = vadd.f32 %v3544_v12, %v3543_v9 }
 0x192   : > { %v3434_v16 = vpop.f32.mrb[48].mxu0  ;;  %v3546_v31 = vpop.f32.mrb[48].mxu1 }
 0x193   : > { %v3435_v45 = vpop.f32.mrb[49].mxu0  ;;  %v3547_v8 = vpop.f32.mrb[49].mxu1 }
 0x194   : > { %v5304_v29 = vadd.f32 %v3435_v45, %v3434_v16  ;;  %v3437_v25 = vpop.f32.mrb[50].mxu0  ;;  %v3548_v27 = vadd.f32 %v3547_v8, %v3546_v31  ;;  %v3549_v56 = vpop.f32.mrb[50].mxu1 }
 0x195   : > { %v3438_v11 = vpop.f32.mrb[51].mxu0  ;;  %v3550_v18 = vpop.f32.mrb[51].mxu1 }
 0x196   : > { %v5306_v32 = vadd.f32 %v3438_v11, %v3437_v25  ;;  %v5308_v34 = vadd.f32 %v3548_v27, %v3412_v17  ;;  %v3551_v38 = vadd.f32 %v3550_v18, %v3549_v56 }
 0x198   : > { %v5310_v7 = vadd.f32 %v3551_v38, %v3415_v49 }
 0x19a   : > { %v3440_v13 = vpop.f32.mrb[52].mxu0  ;;  %v3552_v59 = vpop.f32.mrb[52].mxu1 }
 0x19b   : > { %v3441_v33 = vpop.f32.mrb[53].mxu0  ;;  %v3553_v51 = vpop.f32.mrb[53].mxu1 }
 0x19c   : > { %v5312_v10 = vadd.f32 %v3441_v33, %v3440_v13  ;;  %v3443_v28 = vpop.f32.mrb[54].mxu0  ;;  %v3554_v52 = vadd.f32 %v3553_v51, %v3552_v59  ;;  %v3555_v9 = vpop.f32.mrb[54].mxu1 }
 0x19d   : > { %v3444_v44 = vpop.f32.mrb[55].mxu0  ;;  %v3556_v16 = vpop.f32.mrb[55].mxu1 }
 0x19e   : > { %v5314_v12 = vadd.f32 %v3444_v44, %v3443_v28  ;;  %v5316_v45 = vadd.f32 %v3554_v52, %v3418_v58  ;;  %v3557_v17 = vadd.f32 %v3556_v16, %v3555_v9 }
 0x1a0   : > { %v5318_v31 = vadd.f32 %v3557_v17, %v3421_v35 }
 0x1a2   : > { %5674 = vst [vmem:[#allocation8_spill] sm:$0xff] %v5318_v31  ;;  %v3446_v49 = vpop.f32.mrb[56].mxu0  ;;  %v3558_v8 = vpop.f32.mrb[56].mxu1 }
 0x1a3   : > { %v3447_v25 = vpop.f32.mrb[57].mxu0  ;;  %v3559_v56 = vpop.f32.mrb[57].mxu1 }
 0x1a4   : > { %v5320_v11 = vadd.f32 %v3447_v25, %v3446_v49  ;;  %v3449_v27 = vpop.f32.mrb[58].mxu0  ;;  %v3560_v38 = vadd.f32 %v3559_v56, %v3558_v8  ;;  %v3561_v13 = vpop.f32.mrb[58].mxu1 }
 0x1a5   : > { %v3450_v18 = vpop.f32.mrb[59].mxu0  ;;  %v3562_v59 = vpop.f32.mrb[59].mxu1 }
 0x1a6   : > { %v5322_v33 = vadd.f32 %v3450_v18, %v3449_v27  ;;  %v5324_v28 = vadd.f32 %v3560_v38, %v3424_v47  ;;  %v3563_v58 = vadd.f32 %v3562_v59, %v3561_v13 }
 0x1a8   : > { %v5326_v51 = vadd.f32 %v3563_v58, %v3427_v20 }
 0x1aa   : > { %v3452_v35 = vpop.f32.mrb[60].mxu0  ;;  %v3564_v52 = vpop.f32.mrb[60].mxu1 }
 0x1ab   : > { %v3453_v44 = vpop.f32.mrb[61].mxu0  ;;  %v3565_v17 = vpop.f32.mrb[61].mxu1 }
 0x1ac   : > { %v5328_v9 = vadd.f32 %v3453_v44, %v3452_v35  ;;  %v3455_v16 = vpop.f32.mrb[62].mxu0  ;;  %v3566_v25 = vadd.f32 %v3565_v17, %v3564_v52  ;;  %v3567_v31 = vpop.f32.mrb[62].mxu1 }
 0x1ad   : > { %v3456_v49 = vpop.f32.mrb[63].mxu0  ;;  %v3568_v27 = vpop.f32.mrb[63].mxu1 }
 0x1ae   : > { %v5330_v8 = vadd.f32 %v3456_v49, %v3455_v16  ;;  %v5333_v56 = vadd.f32 %v3566_v25, %v5298_v57  ;;  %v3569_v47 = vadd.f32 %v3568_v27, %v3567_v31 }
 0x1b0   : > { %v5335_v18 = vadd.f32 %v3569_v47, %v3433_v3 }
 0x1b2   : > { %v3772_v20 = vpop.f32.mrb[64].mxu0  ;;  %v3570_v59 = vpop.f32.mrb[64].mxu1 }
 0x1b3   : > { %v1254_v38 = vadd.f32 %v3772_v20, %v5201_v22  ;;  %v1245_v13 = vpop.f32.mrb[65].mxu0  ;;  %v3571_v52 = vpop.f32.mrb[65].mxu1 }
 0x1b4   : > { %v1246_v58 = vadd.f32 %v5193_v61, %v1245_v13  ;;  %v3773_v35 = vpop.f32.mrb[66].mxu0  ;;  %v3572_v3 = vadd.f32 %v3571_v52, %v3570_v59  ;;  %v3573_v31 = vpop.f32.mrb[66].mxu1 }
 0x1b5   : > { %v5340_v44 = vadd.f32 %v5248_v6, %v1254_v38  ;;  %v1257_v16 = vadd.f32 %v3773_v35, %v5204_v23  ;;  %v1248_v17 = vpop.f32.mrb[67].mxu0  ;;  %v3574_v25 = vpop.f32.mrb[67].mxu1 }
 0x1b6   : > { %v5344_v57 = vadd.f32 %v5233_v2, %v1246_v58  ;;  %v1249_v49 = vadd.f32 %v5195_v62, %v1248_v17  ;;  %v5351_v61 = vadd.f32 %v3572_v3, %v5304_v29  ;;  %v3575_v27 = vadd.f32 %v3574_v25, %v3573_v31 }
 0x1b7   : > { %v5348_v22 = vadd.f32 %v5251_v39, %v1257_v16 }
 0x1b8   : > { %v5354_v6 = vadd.f32 %v5236_v26, %v1249_v49  ;;  %v5357_v23 = vadd.f32 %v3575_v27, %v5306_v32 }
 0x1ba   : > { %v3776_v2 = vpop.f32.mrb[68].mxu0  ;;  %v3576_v38 = vpop.f32.mrb[68].mxu1 }
 0x1bb   : > { %v1270_v47 = vadd.f32 %v3776_v2, %v5220_v19  ;;  %v1261_v20 = vpop.f32.mrb[69].mxu0  ;;  %v3577_v29 = vpop.f32.mrb[69].mxu1 }
 0x1bc   : > { %v1262_v62 = vadd.f32 %v5210_v21, %v1261_v20  ;;  %v3777_v39 = vpop.f32.mrb[70].mxu0  ;;  %v3578_v32 = vadd.f32 %v3577_v29, %v3576_v38  ;;  %v3579_v35 = vpop.f32.mrb[70].mxu1 }
 0x1bd   : > { %v5362_v13 = vadd.f32 %v5276_v53, %v1270_v47  ;;  %v1273_v59 = vadd.f32 %v3777_v39, %v5223_v48  ;;  %v1264_v26 = vpop.f32.mrb[71].mxu0  ;;  %v3580_v16 = vpop.f32.mrb[71].mxu1 }
 0x1be   : > { %v5366_v58 = vadd.f32 %v5263_v0, %v1262_v62  ;;  %v1265_v52 = vadd.f32 %v5214_v54, %v1264_v26  ;;  %v5373_v21 = vadd.f32 %v3578_v32, %v5312_v10  ;;  %v3581_v17 = vadd.f32 %v3580_v16, %v3579_v35 }
 0x1bf   : > { %v5370_v19 = vadd.f32 %v5279_v15, %v1273_v59 }
 0x1c0   : > { %v5376_v53 = vadd.f32 %v5266_v4, %v1265_v52  ;;  %v5379_v48 = vadd.f32 %v3581_v17, %v5314_v12 }
 0x1c2   : > { %v3780_v0 = vpop.f32.mrb[72].mxu0  ;;  %v3582_v49 = vpop.f32.mrb[72].mxu1 }
 0x1c3   : > { %v1286_v3 = vadd.f32 %v3780_v0, %v5241_v30  ;;  %v1277_v31 = vpop.f32.mrb[73].mxu0  ;;  %v3583_v10 = vpop.f32.mrb[73].mxu1 }
 0x1c4   : > { %v1278_v54 = vadd.f32 %v5229_v60, %v1277_v31  ;;  %v3781_v15 = vpop.f32.mrb[74].mxu0  ;;  %v3584_v12 = vadd.f32 %v3583_v10, %v3582_v49  ;;  %v3585_v47 = vpop.f32.mrb[74].mxu1 }
 0x1c5   : > { %v5384_v25 = vadd.f32 %v5290_v37, %v1286_v3  ;;  %v1289_v27 = vadd.f32 %v3781_v15, %v5246_v36  ;;  %v1280_v4 = vpop.f32.mrb[75].mxu0  ;;  %v3586_v38 = vpop.f32.mrb[75].mxu1 }
 0x1c6   : > { %v5388_v2 = vadd.f32 %v5284_v40, %v1278_v54  ;;  %v1281_v20 = vadd.f32 %v5231_v14, %v1280_v4  ;;  %v5395_v60 = vadd.f32 %v3584_v12, %v5320_v11  ;;  %v3587_v62 = vadd.f32 %v3586_v38, %v3585_v47 }
 0x1c7   : > { %v5392_v30 = vadd.f32 %v5292_v41, %v1289_v27 }
 0x1c8   : > { %v1586_v37 = vadd.f32 %v5288_v1, %v1281_v20  ;;  %v5399_v36 = vadd.f32 %v3587_v62, %v5322_v33 }
 0x1ca   : > { %v3784_v39 = vpop.f32.mrb[76].mxu0  ;;  %v3588_v59 = vpop.f32.mrb[76].mxu1 }
 0x1cb   : > { %v1302_v40 = vadd.f32 %v3784_v39, %v5271_v5  ;;  %v1293_v29 = vpop.f32.mrb[77].mxu0  ;;  %v3589_v32 = vpop.f32.mrb[77].mxu1 }
 0x1cc   : > { %v1294_v14 = vadd.f32 %v5258_v46, %v1293_v29  ;;  %v3785_v26 = vpop.f32.mrb[78].mxu0  ;;  %v3590_v33 = vadd.f32 %v3589_v32, %v3588_v59  ;;  %v3591_v52 = vpop.f32.mrb[78].mxu1 }
 0x1cd   : > { %v5404_v41 = vadd.f32 %v5300_v24, %v1302_v40  ;;  %v1305_v11 = vadd.f32 %v3785_v26, %v5274_v55  ;;  %v1296_v35 = vpop.f32.mrb[79].mxu0  ;;  %v3592_v17 = vpop.f32.mrb[79].mxu1 }
 0x1ce   : > { %v5408_v1 = vadd.f32 %v5294_v50, %v1294_v14  ;;  %v1297_v16 = vadd.f32 %v5261_v43, %v1296_v35  ;;  %v5415_v46 = vadd.f32 %v3590_v33, %v5328_v9  ;;  %v3593_v0 = vadd.f32 %v3592_v17, %v3591_v52 }
 0x1cf   : > { %v5412_v5 = vadd.f32 %v5302_v42, %v1305_v11 }
 0x1d0   : > { %v1602_v24 = vadd.f32 %v5296_v63, %v1297_v16  ;;  %v5419_v55 = vadd.f32 %v3593_v0, %v5330_v8 }
 0x1d2   : > { %v3634_v3 = vpop.f32.mrb[80].mxu0 }
 0x1d3   : > { %v3635_v50 = vpop.f32.mrb[81].mxu0 }
 0x1d4   : > { %v3636_v31 = vadd.f32 %v3635_v50, %v3634_v3  ;;  %v3637_v49 = vpop.f32.mrb[82].mxu0 }
 0x1d5   : > { %v3638_v54 = vpop.f32.mrb[83].mxu0 }
 0x1d6   : > { %v3639_v15 = vadd.f32 %v3638_v54, %v3637_v49  ;;  %v5422_v43 = vadd.f32 %v3636_v31, %v5344_v57 }
 0x1d8   : > { %v5425_v42 = vadd.f32 %v3639_v15, %v5354_v6 }
 0x1da   : > { %v3640_v9 = vpop.f32.mrb[84].mxu0 }
 0x1db   : > { %v3641_v10 = vpop.f32.mrb[85].mxu0 }
 0x1dc   : > { %v3642_v27 = vadd.f32 %v3641_v10, %v3640_v9  ;;  %v3643_v63 = vpop.f32.mrb[86].mxu0 }
 0x1dd   : > { %v3644_v4 = vpop.f32.mrb[87].mxu0 }
 0x1de   : > { %v3645_v12 = vadd.f32 %v3644_v4, %v3643_v63  ;;  %v5428_v8 = vadd.f32 %v3642_v27, %v5340_v44 }
 0x1e0   : > { %v5431_v47 = vadd.f32 %v3645_v12, %v5348_v22 }
 0x1e2   : > { %v3646_v20 = vpop.f32.mrb[88].mxu0 }
 0x1e3   : > { %v3647_v38 = vpop.f32.mrb[89].mxu0 }
 0x1e4   : > { %v3648_v62 = vadd.f32 %v3647_v38, %v3646_v20  ;;  %v3649_v57 = vpop.f32.mrb[90].mxu0 }
 0x1e5   : > { %v3650_v39 = vpop.f32.mrb[91].mxu0 }
 0x1e6   : > { %v3651_v40 = vadd.f32 %v3650_v39, %v3649_v57  ;;  %v5434_v6 = vadd.f32 %v3648_v62, %v5366_v58  ;;  %v3316_v39 = vld [vmem:[%s4520_s26 + $0x8] sm:$0xff]  }
 0x1e8   : > { %v5437_v29 = vadd.f32 %v3651_v40, %v5376_v53 }
 0x1ea   : > { %v3652_v59 = vpop.f32.mrb[92].mxu0 }
 0x1eb   : > { %v3653_v14 = vpop.f32.mrb[93].mxu0 }
 0x1ec   : > { %v3654_v26 = vadd.f32 %v3653_v14, %v3652_v59  ;;  %v3655_v44 = vpop.f32.mrb[94].mxu0  ;;  %v3173_v59 = vld [vmem:[%s4520_s26] sm:$0xff]  }
 0x1ed   : > { %v3656_v32 = vpop.f32.mrb[95].mxu0 }
 0x1ee   : > { %v3657_v11 = vadd.f32 %v3656_v32, %v3655_v44  ;;  %v5440_v22 = vadd.f32 %v3654_v26, %v5362_v13  ;;  %v3178_v26 = vunpack.c.l.bf16 %v3316_v39  ;;  %v3179_v32 = vunpack.c.h.bf16 %v3316_v39 }
 0x1f0   : > { %v5443_v35 = vadd.f32 %v3657_v11, %v5370_v19  ;;  %v3318_v11 = vld [vmem:[%s4520_s26 + $0x18] sm:$0xff]  }
 0x1f2   : > { %v3658_v33 = vpop.f32.mrb[96].mxu0 }
 0x1f3   : > { %v3659_v52 = vpop.f32.mrb[97].mxu0 }
 0x1f4   : > { %v3660_v16 = vadd.f32 %v3659_v52, %v3658_v33  ;;  %v3661_v58 = vpop.f32.mrb[98].mxu0  ;;  %v3317_v52 = vld [vmem:[%s4520_s26 + $0x10] sm:$0xff]  }
 0x1f5   : > { %v3662_v17 = vpop.f32.mrb[99].mxu0 }
 0x1f6   : > { %v3663_v0 = vadd.f32 %v3662_v17, %v3661_v58  ;;  %v5446_v53 = vadd.f32 %v3660_v16, %v5388_v2  ;;  %v5474_v58 = vld [vmem:[%s5664_s2] ss:$0 sm:$0xff]  ;;  %v2490_v17 = vmul.f32 0.5, %v3178_v26  ;;  %v3319_v26 = vld [vmem:[%s4520_s26 + $0x20] sm:$0xff]  }
 0x1f8   : > { %v5448_v3 = vadd.f32 %v3663_v0, %v1586_v37 }
 0x1fa   : > { %v3664_v50 = vpop.f32.mrb[100].mxu0 }
 0x1fb   : > { %v3665_v31 = vpop.f32.mrb[101].mxu0 }
 0x1fc   : > { %v3666_v49 = vadd.f32 %v3665_v31, %v3664_v50  ;;  %v3667_v54 = vpop.f32.mrb[102].mxu0  ;;  %v3175_v50 = vunpack.c.h.bf16 %v3173_v59 }
 0x1fd   : > { %v3668_v13 = vpop.f32.mrb[103].mxu0 }
 0x1fe   : > { %v3669_v15 = vadd.f32 %v3668_v13, %v3667_v54  ;;  %v5451_v19 = vadd.f32 %v3666_v49, %v5384_v25  ;;  %v2491_v54 = vmul.f32 0.5, %v3179_v32  ;;  %v2489_v39 = vmul.f32 0.5, %v3175_v50 }
 0x200   : > { %v5454_v9 = vadd.f32 %v3669_v15, %v5392_v30  ;;  %v3186_v15 = vunpack.c.l.bf16 %v3318_v11 }
 0x202   : > { %v3670_v10 = vpop.f32.mrb[104].mxu0 }
 0x203   : > { %v3671_v27 = vpop.f32.mrb[105].mxu0 }
 0x204   : > { %v3672_v2 = vadd.f32 %v3671_v27, %v3670_v10  ;;  %v3673_v63 = vpop.f32.mrb[106].mxu0 }
 0x205   : > { %v3674_v37 = vpop.f32.mrb[107].mxu0 }
 0x206   : > { %v3675_v4 = vadd.f32 %v3674_v37, %v3673_v63  ;;  %v5457_v12 = vadd.f32 %v3672_v2, %v5408_v1  ;;  %v3174_v1 = vunpack.c.l.bf16 %v3173_v59  ;;  %v3182_v63 = vunpack.c.l.bf16 %v3317_v52 }
 0x208   : > { %v5459_v20 = vadd.f32 %v3675_v4, %v1602_v24  ;;  %v2488_v49 = vmul.f32 0.5, %v3174_v1 }
 0x20a   : > { %v3676_v38 = vpop.f32.mrb[108].mxu0 }
 0x20b   : > { %v3677_v25 = vpop.f32.mrb[109].mxu0 }
 0x20c   : > { %v3678_v62 = vadd.f32 %v3677_v25, %v3676_v38  ;;  %v3679_v57 = vpop.f32.mrb[110].mxu0  ;;  %v3187_v25 = vunpack.c.h.bf16 %v3318_v11  ;;  %v2492_v11 = vmul.f32 0.5, %v3182_v63 }
 0x20d   : > { %v3680_v30 = vpop.f32.mrb[111].mxu0 }
 0x20e   : > { %v3681_v40 = vadd.f32 %v3680_v30, %v3679_v57  ;;  %v5464_v14 = vadd.f32 %v3678_v62, %v5404_v41  ;;  %v3183_v62 = vunpack.c.h.bf16 %v3317_v52 }
 0x210   : > { %v5467_v44 = vadd.f32 %v3681_v40, %v5412_v5 }
 0x212   : > { %v3682_v24 = vpop.f32.mrb[112].mxu0  ;;  %v3868_v16 = vpop.f32.mrb[80].mxu1 }
 0x213   : > { %v3683_v33 = vpop.f32.mrb[113].mxu0  ;;  %v3917_v31 = vadd.f32 %v5428_v8, %v3868_v16  ;;  %v2226_v5 = vpop.f32.mrb[81].mxu1  ;;  %v2495_v16 = vmul.f32 0.5, %v3187_v25 }
 0x214   : > { %v3684_v0 = vadd.f32 %v3683_v33, %v3682_v24  ;;  %v3685_v41 = vpop.f32.mrb[114].mxu0  ;;  %v3921_v10 = vadd.f32 %v5422_v43, %v2226_v5  ;;  %v3869_v27 = vpop.f32.mrb[82].mxu1  ;;  %v3320_v43 = vld [vmem:[%s4520_s26 + $0x28] sm:$0xff]   ;;  %v2494_v24 = vmul.f32 0.5, %v3186_v15  ;;  %v3190_v5 = vunpack.c.l.bf16 %v3319_v26 }
 0x215   : > { %v3686_v13 = vpop.f32.mrb[115].mxu0  ;;  %v2394_v4 = vadd.f32 %v3917_v31, %v5474_v58  ;;  %v3925_v38 = vadd.f32 %v5431_v47, %v3869_v27  ;;  %v2229_v8 = vpop.f32.mrb[83].mxu1 }
 0x216   : > { %v3687_v2 = vadd.f32 %v3686_v13, %v3685_v41  ;;  %v5479_v37 = vadd.f32 %v5308_v34, %v3684_v0  ;;  %v2392_v57 = vadd.f32 %v3921_v10, %v5474_v58  ;;  %v3929_v30 = vadd.f32 %v5425_v42, %v2229_v8 }
 0x217   : > { %v2522_v59 = vadd.f32 %v2490_v17, %v2394_v4  ;;  %v2395_v34 = vadd.f32 %v3925_v38, %v5474_v58  ;;  %v2493_v0 = vmul.f32 0.5, %v3183_v62  ;;  %v3194_v42 = vunpack.c.l.bf16 %v3320_v43 }
 0x218   : > { %v5487_v40 = vadd.f32 %v5310_v7, %v3687_v2  ;;  %v2520_v1 = vadd.f32 %v2488_v49, %v2392_v57  ;;  %v2393_v32 = vadd.f32 %v3929_v30, %v5474_v58  ;;  %v3195_v17 = vunpack.c.h.bf16 %v3320_v43 }
 0x219   : > { %v2523_v33 = vadd.f32 %v2491_v54, %v2395_v34  ;;  %v2554_v13 = vmax.f32 %v2522_v59, 0.0  ;;  %v3322_v34 = vld [vmem:[%s4520_s26 + $0x38] sm:$0xff]  }
 0x21a   : > { %v3688_v47 = vpop.f32.mrb[116].mxu0  ;;  %v2521_v41 = vadd.f32 %v2489_v39, %v2393_v32  ;;  %v3872_v50 = vpop.f32.mrb[84].mxu1  ;;  %v2552_v10 = vmax.f32 %v2520_v1, 0.0  ;;  %v3321_v32 = vld [vmem:[%s4520_s26 + $0x30] sm:$0xff]  }
 0x21b   : > { %v3689_v52 = vpop.f32.mrb[117].mxu0  ;;  %v2555_v27 = vmax.f32 %v2523_v33, 0.0  ;;  %v3933_v49 = vadd.f32 %v5440_v22, %v3872_v50  ;;  %v2242_v2 = vpop.f32.mrb[85].mxu1  ;;  %v3191_v22 = vunpack.c.h.bf16 %v3319_v26 }
 0x21c   : > { %v3690_v31 = vadd.f32 %v3689_v52, %v3688_v47  ;;  %v3691_v7 = vpop.f32.mrb[118].mxu0  ;;  %v2553_v54 = vmax.f32 %v2521_v41, 0.0  ;;  %v3937_v63 = vadd.f32 %v5434_v6, %v2242_v2  ;;  %v3873_v4 = vpop.f32.mrb[86].mxu1  ;;  %v5675_v6 = vld [vmem:[#allocation8_spill] sm:$0xff]  ;;  %v2496_v52 = vmul.f32 0.5, %v3190_v5 }
 0x21d   : > { %v3692_v15 = vpop.f32.mrb[119].mxu0  ;;  %v3244_v25 = vpack.c.bf16 %v2555_v27, %v2554_v13  ;;  %v2398_v62 = vadd.f32 %v3933_v49, %v5474_v58  ;;  %v3941_v57 = vadd.f32 %v5443_v35, %v3873_v4  ;;  %v2245_v30 = vpop.f32.mrb[87].mxu1  ;;  %v3202_v13 = vunpack.c.l.bf16 %v3322_v34 }
 0x21e   : > { %v3693_v38 = vadd.f32 %v3692_v15, %v3691_v7  ;;  %v5495_v8 = vadd.f32 %v5316_v45, %v3690_v31  ;;  %v3239_v39 = vpack.c.bf16 %v2553_v54, %v2552_v10  ;;  %v2396_v43 = vadd.f32 %v3937_v63, %v5474_v58 }
 0x21f   : > { %v3945_v59 = vadd.f32 %v5437_v29, %v2245_v30  ;;  %3331 = vst [vmem:[%s5507_s14 + $0x8] sm:$0xff] %v3244_v25   ;;  %v2526_v45 = vadd.f32 %v2494_v24, %v2398_v62  ;;  %v2399_v35 = vadd.f32 %v3941_v57, %v5474_v58  ;;  %v2498_v29 = vmul.f32 0.5, %v3194_v42 }
 0x220   : > { %v5503_v1 = vadd.f32 %v5675_v6, %v3693_v38  ;;  %3240 = vst [vmem:[%s5507_s14] sm:$0xff] %v3239_v39   ;;  %v2524_v26 = vadd.f32 %v2492_v11, %v2396_v43  ;;  %v2499_v31 = vmul.f32 0.5, %v3195_v17  ;;  %v2497_v7 = vmul.f32 0.5, %v3191_v22 }
 0x221   : > { %v2397_v47 = vadd.f32 %v3945_v59, %v5474_v58  ;;  %v2527_v41 = vadd.f32 %v2495_v16, %v2399_v35  ;;  %v3198_v24 = vunpack.c.l.bf16 %v3321_v32  ;;  %v3203_v15 = vunpack.c.h.bf16 %v3322_v34 }
 0x222   : > { %v3694_v33 = vpop.f32.mrb[120].mxu0  ;;  %v3876_v27 = vpop.f32.mrb[88].mxu1  ;;  %v2558_v54 = vmax.f32 %v2526_v45, 0.0  ;;  %v2556_v63 = vmax.f32 %v2524_v26, 0.0  ;;  %v3199_v22 = vunpack.c.h.bf16 %v3321_v32  ;;  %v3323_v45 = vld [vmem:[%s4520_s26 + $0x40] sm:$0xff]   ;;  %v2502_v32 = vmul.f32 0.5, %v3202_v13 }
 0x223   : > { %v3695_v50 = vpop.f32.mrb[121].mxu0  ;;  %v2525_v10 = vadd.f32 %v2493_v0, %v2397_v47  ;;  %v2559_v4 = vmax.f32 %v2527_v41, 0.0  ;;  %v3949_v11 = vadd.f32 %v5451_v19, %v3876_v27  ;;  %v2258_v38 = vpop.f32.mrb[89].mxu1  ;;  %v2500_v47 = vmul.f32 0.5, %v3198_v24 }
 0x224   : > { %v3696_v49 = vadd.f32 %v3695_v50, %v3694_v33  ;;  %v3697_v2 = vpop.f32.mrb[122].mxu0  ;;  %v3953_v5 = vadd.f32 %v5446_v53, %v2258_v38  ;;  %v3877_v17 = vpop.f32.mrb[90].mxu1  ;;  %v3324_v53 = vld [vmem:[%s4520_s26 + $0x48] sm:$0xff]   ;;  %v2503_v50 = vmul.f32 0.5, %v3203_v15 }
 0x225   : > { %v3698_v42 = vpop.f32.mrb[123].mxu0  ;;  %v2557_v16 = vmax.f32 %v2525_v10, 0.0  ;;  %v3254_v62 = vpack.c.bf16 %v2559_v4, %v2558_v54  ;;  %v2402_v57 = vadd.f32 %v3949_v11, %v5474_v58  ;;  %v3957_v30 = vadd.f32 %v5454_v9, %v3877_v17  ;;  %v2261_v19 = vpop.f32.mrb[91].mxu1 }
 0x226   : > { %v3699_v0 = vadd.f32 %v3698_v42, %v3697_v2  ;;  %v5517_v25 = vadd.f32 %v5324_v28, %v3696_v49  ;;  %v2400_v43 = vadd.f32 %v3953_v5, %v5474_v58  ;;  %v3961_v59 = vadd.f32 %v5448_v3, %v2261_v19 }
 0x227   : > { %v3249_v39 = vpack.c.bf16 %v2557_v16, %v2556_v63  ;;  %3333 = vst [vmem:[%s5507_s14 + $0x18] sm:$0xff] %v3254_v62   ;;  %v2530_v6 = vadd.f32 %v2498_v29, %v2402_v57  ;;  %v2403_v28 = vadd.f32 %v3957_v30, %v5474_v58  ;;  %v2501_v3 = vmul.f32 0.5, %v3199_v22 }
 0x228   : > { %v5525_v34 = vadd.f32 %v5326_v51, %v3699_v0  ;;  %v2528_v35 = vadd.f32 %v2496_v52, %v2400_v43  ;;  %v2401_v9 = vadd.f32 %v3961_v59, %v5474_v58  ;;  %v3210_v10 = vunpack.c.l.bf16 %v3324_v53 }
 0x229   : > { %3332 = vst [vmem:[%s5507_s14 + $0x10] sm:$0xff] %v3249_v39   ;;  %v2531_v33 = vadd.f32 %v2499_v31, %v2403_v28  ;;  %v3206_v29 = vunpack.c.l.bf16 %v3323_v45  ;;  %v3211_v54 = vunpack.c.h.bf16 %v3324_v53  ;;  %v2562_v63 = vmax.f32 %v2530_v6, 0.0  ;;  %v3325_v39 = vld [vmem:[%s4520_s26 + $0x50] sm:$0xff]  }
 0x22a   : > { %v3700_v26 = vpop.f32.mrb[124].mxu0  ;;  %v2529_v27 = vadd.f32 %v2497_v7, %v2401_v9  ;;  %v3880_v51 = vpop.f32.mrb[92].mxu1  ;;  %v2560_v4 = vmax.f32 %v2528_v35, 0.0  ;;  %v3207_v0 = vunpack.c.h.bf16 %v3323_v45  ;;  %v2506_v53 = vmul.f32 0.5, %v3210_v10 }
 0x22b   : > { %v3701_v41 = vpop.f32.mrb[125].mxu0  ;;  %v2563_v11 = vmax.f32 %v2531_v33, 0.0  ;;  %v3965_v52 = vadd.f32 %v5464_v14, %v3880_v51  ;;  %v2274_v38 = vpop.f32.mrb[93].mxu1  ;;  %v2504_v6 = vmul.f32 0.5, %v3206_v29  ;;  %v2507_v35 = vmul.f32 0.5, %v3211_v54 }
 0x22c   : > { %v3702_v49 = vadd.f32 %v3701_v41, %v3700_v26  ;;  %v3703_v2 = vpop.f32.mrb[126].mxu0  ;;  %v2561_v31 = vmax.f32 %v2529_v27, 0.0  ;;  %v3969_v24 = vadd.f32 %v5457_v12, %v2274_v38  ;;  %v3881_v15 = vpop.f32.mrb[94].mxu1  ;;  %v3326_v12 = vld [vmem:[%s4520_s26 + $0x58] sm:$0xff]  }
 0x22d   : > { %v3704_v13 = vpop.f32.mrb[127].mxu0  ;;  %v3264_v16 = vpack.c.bf16 %v2563_v11, %v2562_v63  ;;  %v2406_v5 = vadd.f32 %v3965_v52, %v5474_v58  ;;  %v3973_v17 = vadd.f32 %v5467_v44, %v3881_v15  ;;  %v2277_v14 = vpop.f32.mrb[95].mxu1  ;;  %v3218_v9 = vunpack.c.l.bf16 %v3326_v12 }
 0x22e   : > { %v3705_v7 = vadd.f32 %v3704_v13, %v3703_v2  ;;  %v5535_v42 = vadd.f32 %v5333_v56, %v3702_v49  ;;  %v3259_v62 = vpack.c.bf16 %v2561_v31, %v2560_v4  ;;  %v2404_v57 = vadd.f32 %v3969_v24, %v5474_v58 }
 0x22f   : > { %v3977_v30 = vadd.f32 %v5459_v20, %v2277_v14  ;;  %3335 = vst [vmem:[%s5507_s14 + $0x28] sm:$0xff] %v3264_v16   ;;  %v2534_v22 = vadd.f32 %v2502_v32, %v2406_v5  ;;  %v2407_v56 = vadd.f32 %v3973_v17, %v5474_v58  ;;  %v2505_v20 = vmul.f32 0.5, %v3207_v0  ;;  %v3328_v16 = vld [vmem:[%s4520_s26 + $0x68] sm:$0xff]   ;;  %v5566_v5 = vld [vmem:[%s4520_s26 + $0x60] sm:$0xff]  }
 0x230   : > { %v5543_v19 = vadd.f32 %v5335_v18, %v3705_v7  ;;  %3334 = vst [vmem:[%s5507_s14 + $0x20] sm:$0xff] %v3259_v62   ;;  %v2532_v43 = vadd.f32 %v2500_v47, %v2404_v57  ;;  %v3214_v32 = vunpack.c.l.bf16 %v3325_v39  ;;  %v3219_v27 = vunpack.c.h.bf16 %v3326_v12 }
 0x231   : > { %v2405_v44 = vadd.f32 %v3977_v30, %v5474_v58  ;;  %v2535_v28 = vadd.f32 %v2503_v50, %v2407_v56  ;;  %v2566_v51 = vmax.f32 %v2534_v22, 0.0  ;;  %v3215_v13 = vunpack.c.h.bf16 %v3325_v39 }
 0x232   : > { %v3706_v59 = vpop.f32.mrb[128].mxu0  ;;  %v3884_v18 = vpop.f32.mrb[0].mxu1  ;;  %v2564_v49 = vmax.f32 %v2532_v43, 0.0  ;;  %v2510_v0 = vmul.f32 0.5, %v3218_v9  ;;  %v2508_v30 = vmul.f32 0.5, %v3214_v32  ;;  %v3226_v43 = vunpack.c.l.bf16 %v3328_v16 }
 0x233   : > { %v3707_v45 = vpop.f32.mrb[129].mxu0  ;;  %v2533_v26 = vadd.f32 %v2501_v3, %v2405_v44  ;;  %v2567_v2 = vmax.f32 %v2535_v28, 0.0  ;;  %v3980_v47 = vadd.f32 %v5495_v8, %v3884_v18  ;;  %v2290_v63 = vpop.f32.mrb[1].mxu1  ;;  %v2509_v12 = vmul.f32 0.5, %v3215_v13 }
 0x234   : > { %v3708_v33 = vadd.f32 %v3707_v45, %v3706_v59  ;;  %v3709_v41 = vpop.f32.mrb[130].mxu0  ;;  %v3983_v50 = vadd.f32 %v5479_v37, %v2290_v63  ;;  %v3885_v54 = vpop.f32.mrb[2].mxu1  ;;  %v3222_v44 = vunpack.c.l.bf16 %v5566_v5 }
 0x235   : > { %v3710_v10 = vpop.f32.mrb[131].mxu0  ;;  %v2565_v29 = vmax.f32 %v2533_v26, 0.0  ;;  %v3274_v11 = vpack.c.bf16 %v2567_v2, %v2566_v51  ;;  %v2410_v52 = vadd.f32 %v3980_v47, %v5474_v58  ;;  %v3986_v38 = vadd.f32 %v5503_v1, %v3885_v54  ;;  %v2293_v8 = vpop.f32.mrb[3].mxu1 }
 0x236   : > { %v3711_v3 = vadd.f32 %v3710_v10, %v3709_v41  ;;  %v5553_v4 = vadd.f32 %v5351_v61, %v3708_v33  ;;  %v2408_v24 = vadd.f32 %v3983_v50, %v5474_v58  ;;  %v3989_v37 = vadd.f32 %v5487_v40, %v2293_v8 }
 0x237   : > { %v3269_v31 = vpack.c.bf16 %v2565_v29, %v2564_v49  ;;  %3337 = vst [vmem:[%s5507_s14 + $0x38] sm:$0xff] %v3274_v11   ;;  %v2538_v7 = vadd.f32 %v2506_v53, %v2410_v52  ;;  %v2411_v61 = vadd.f32 %v3986_v38, %v5474_v58  ;;  %v2511_v40 = vmul.f32 0.5, %v3219_v27 }
 0x238   : > { %v5560_v15 = vadd.f32 %v5357_v23, %v3711_v3  ;;  %v2536_v17 = vadd.f32 %v2504_v6, %v2408_v24  ;;  %v2409_v1 = vadd.f32 %v3989_v37, %v5474_v58  ;;  %v3227_v49 = vunpack.c.h.bf16 %v3328_v16 }
 0x239   : > { %3336 = vst [vmem:[%s5507_s14 + $0x30] sm:$0xff] %v3269_v31   ;;  %v2539_v62 = vadd.f32 %v2507_v35, %v2411_v61  ;;  %v2570_v59 = vmax.f32 %v2538_v7, 0.0  ;;  %v3223_v11 = vunpack.c.h.bf16 %v5566_v5 }
 0x23a   : > { %v3712_v14 = vpop.f32.mrb[132].mxu0  ;;  %v2537_v23 = vadd.f32 %v2505_v20, %v2409_v1  ;;  %v3888_v22 = vpop.f32.mrb[4].mxu1  ;;  %v2568_v53 = vmax.f32 %v2536_v17, 0.0 }
 0x23b   : > { %v3713_v57 = vpop.f32.mrb[133].mxu0  ;;  %v2571_v28 = vmax.f32 %v2539_v62, 0.0  ;;  %v3992_v6 = vadd.f32 %v5535_v42, %v3888_v22  ;;  %v2306_v45 = vpop.f32.mrb[5].mxu1 }
 0x23c   : > { %v3714_v56 = vadd.f32 %v3713_v57, %v3712_v14  ;;  %v3715_v39 = vpop.f32.mrb[134].mxu0  ;;  %v2569_v35 = vmax.f32 %v2537_v23, 0.0  ;;  %v3995_v26 = vadd.f32 %v5517_v25, %v2306_v45  ;;  %v3889_v18 = vpop.f32.mrb[6].mxu1 }
 0x23d   : > { %v3716_v9 = vpop.f32.mrb[135].mxu0  ;;  %v3284_v41 = vpack.c.bf16 %v2571_v28, %v2570_v59  ;;  %v2414_v32 = vadd.f32 %v3992_v6, %v5474_v58  ;;  %v3998_v27 = vadd.f32 %v5543_v19, %v3889_v18  ;;  %v2309_v51 = vpop.f32.mrb[7].mxu1  ;;  %v2514_v19 = vmul.f32 0.5, %v3226_v43  ;;  %v3329_v43 = vld [vmem:[%s4520_s26 + $0x70] sm:$0xff]  }
 0x23e   : > { %v3717_v20 = vadd.f32 %v3716_v9, %v3715_v39  ;;  %v4003_v33 = vadd.f32 %v5373_v21, %v3714_v56  ;;  %v3279_v2 = vpack.c.bf16 %v2569_v35, %v2568_v53  ;;  %v2412_v42 = vadd.f32 %v3995_v26, %v5474_v58  ;;  %v3330_v39 = vld [vmem:[%s4520_s26 + $0x78] sm:$0xff]   ;;  %s2759_s26 = sshll.u32 %s5507_s14, 4  ;;  %s5611_s26 = int_to_ptr.vmem [resolvable:$true] %s2759_s26 }
 0x23f   : > { %v4001_v47 = vadd.f32 %v5525_v34, %v2309_v51  ;;  %3339 = vst [vmem:[%s5507_s14 + $0x48] sm:$0xff] %v3284_v41   ;;  %v2542_v25 = vadd.f32 %v2510_v0, %v2414_v32  ;;  %v2415_v10 = vadd.f32 %v3998_v27, %v5474_v58  ;;  %v2512_v34 = vmul.f32 0.5, %v3222_v44  ;;  %s4287_s7 = scalar_lea.vmem %s5611_s26, 2048  ;;  %p4294_p13 = scmp.lt.s32.totalorder %s5611_s26, %s4292_s11 }
 0x240   : > { %v4009_v63 = vadd.f32 %v5379_v48, %v3717_v20  ;;  %3338 = vst [vmem:[%s5507_s14 + $0x40] sm:$0xff] %v3279_v2   ;;  %v2540_v21 = vadd.f32 %v2508_v30, %v2412_v42  ;;  %v2515_v48 = vmul.f32 0.5, %v3227_v49  ;;  %v3234_v9 = vunpack.c.l.bf16 %v3330_v39  ;;  %p4288_p9 = scmp.ne.s32.totalorder %s5611_s26, %s4287_s7  ;;  %p4295_p2 = scmp.lt.s32.totalorder %s4293_s21, %s4287_s7 }
 0x241   : > { %v2413_v29 = vadd.f32 %v4001_v47, %v5474_v58  ;;  %v2543_v54 = vadd.f32 %v2511_v40, %v2415_v10  ;;  %v2574_v31 = vmax.f32 %v2542_v25, 0.0  ;;  %v3230_v35 = vunpack.c.l.bf16 %v3329_v43 }
 0x242   : > { %v3718_v50 = vpop.f32.mrb[136].mxu0  ;;  %v3892_v38 = vpop.f32.mrb[8].mxu1  ;;  %v2572_v24 = vmax.f32 %v2540_v21, 0.0  ;;  %v3235_v49 = vunpack.c.h.bf16 %v3330_v39  ;;  %v2518_v21 = vmul.f32 0.5, %v3234_v9  ;;  %p4289_p0 = pnand %p4288_p9, %p5676_p11  ;;  %p4296_p5 = por %p4295_p2, %p4294_p13 }
 0x243   : > { %v3719_v3 = vpop.f32.mrb[137].mxu0  ;;  %v2541_v52 = vadd.f32 %v2509_v12, %v2413_v29  ;;  %v2575_v37 = vmax.f32 %v2543_v54, 0.0  ;;  %v4004_v7 = vadd.f32 %v4003_v33, %v3892_v38  ;;  %v2322_v61 = vpop.f32.mrb[9].mxu1  ;;  %v2513_v12 = vmul.f32 0.5, %v3223_v11 }
 0x244   : > { %v3720_v8 = vadd.f32 %v3719_v3, %v3718_v50  ;;  %v3721_v13 = vpop.f32.mrb[138].mxu0  ;;  %v4007_v1 = vadd.f32 %v5553_v4, %v2322_v61  ;;  %v3893_v14 = vpop.f32.mrb[10].mxu1  ;;  %v3231_v33 = vunpack.c.h.bf16 %v3329_v43  ;;  %v2516_v29 = vmul.f32 0.5, %v3230_v35  ;;  %p4290_p6 = pneg %p4289_p0 }
 0x245   : > { %v3722_v16 = vpop.f32.mrb[139].mxu0  ;;  %v2573_v17 = vmax.f32 %v2541_v52, 0.0  ;;  %v3294_v62 = vpack.c.bf16 %v2575_v37, %v2574_v31  ;;  %v2418_v57 = vadd.f32 %v4004_v7, %v5474_v58  ;;  %v4010_v30 = vadd.f32 %v4009_v63, %v3893_v14  ;;  %v2325_v40 = vpop.f32.mrb[11].mxu1 }
 0x246   : > { %v3723_v5 = vadd.f32 %v3722_v16, %v3721_v13  ;;  %v4018_v0 = vadd.f32 %v5395_v60, %v3720_v8  ;;  %v2416_v22 = vadd.f32 %v4007_v1, %v5474_v58  ;;  %v4013_v56 = vadd.f32 %v5560_v15, %v2325_v40  ;;  %p4297_p4 = pnand %p4296_p5, %p4290_p6 }
 0x247   : > { %v3289_v23 = vpack.c.bf16 %v2573_v17, %v2572_v24  ;;  %3341 = vst [vmem:[%s5507_s14 + $0x58] sm:$0xff] %v3294_v62   ;;  %v2546_v44 = vadd.f32 %v2514_v19, %v2418_v57  ;;  %v2419_v59 = vadd.f32 %v4010_v30, %v5474_v58  ;;  %v2517_v38 = vmul.f32 0.5, %v3231_v33 }
 0x248   : > { %v4024_v4 = vadd.f32 %v5399_v36, %v3723_v5  ;;  %v2544_v60 = vadd.f32 %v2512_v34, %v2416_v22  ;;  %v2417_v53 = vadd.f32 %v4013_v56, %v5474_v58  ;;  %v2519_v34 = vmul.f32 0.5, %v3235_v49 }
 0x249   : > { %3340 = vst [vmem:[%s5507_s14 + $0x50] sm:$0xff] %v3289_v23   ;;  %v2547_v6 = vadd.f32 %v2515_v48, %v2419_v59  ;;  %v2578_v41 = vmax.f32 %v2546_v44, 0.0 }
 0x24a   : > { %v3724_v28 = vpop.f32.mrb[140].mxu0  ;;  %v2545_v26 = vadd.f32 %v2513_v12, %v2417_v53  ;;  %v3896_v18 = vpop.f32.mrb[12].mxu1  ;;  %v2576_v36 = vmax.f32 %v2544_v60, 0.0 }
 0x24b   : > { %v3725_v45 = vpop.f32.mrb[141].mxu0  ;;  %v2579_v32 = vmax.f32 %v2547_v6, 0.0  ;;  %v2338_v27 = vpop.f32.mrb[13].mxu1 }
 0x24c   : > { %v3726_v15 = vadd.f32 %v3725_v45, %v3724_v28  ;;  %v3727_v20 = vpop.f32.mrb[142].mxu0  ;;  %v2577_v2 = vmax.f32 %v2545_v26, 0.0  ;;  %v4019_v47 = vadd.f32 %v4018_v0, %v2338_v27  ;;  %v3897_v63 = vpop.f32.mrb[14].mxu1 }
 0x24d   : > { %v3728_v51 = vpop.f32.mrb[143].mxu0  ;;  %v3304_v10 = vpack.c.bf16 %v2579_v32, %v2578_v41  ;;  %v2341_v50 = vpop.f32.mrb[15].mxu1 }
 0x24e   : > { %v4015_v42 = vadd.f32 %v5415_v46, %v3726_v15  ;;  %v3729_v25 = vadd.f32 %v3728_v51, %v3727_v20  ;;  %v3299_v54 = vpack.c.bf16 %v2577_v2, %v2576_v36  ;;  %v2420_v3 = vadd.f32 %v4019_v47, %v5474_v58 }
 0x24f   : > { %3343 = vst [vmem:[%s5507_s14 + $0x68] sm:$0xff] %v3304_v10   ;;  %v4025_v52 = vadd.f32 %v4024_v4, %v2341_v50 }
 0x250   : > { %v4016_v19 = vadd.f32 %v4015_v42, %v3896_v18  ;;  %v4021_v11 = vadd.f32 %v5419_v55, %v3729_v25  ;;  %3342 = vst [vmem:[%s5507_s14 + $0x60] sm:$0xff] %v3299_v54   ;;  %v2548_v13 = vadd.f32 %v2516_v29, %v2420_v3 }
 0x251   : > { %v2421_v48 = vadd.f32 %v4025_v52, %v5474_v58 }
 0x252   : > { %v2422_v46 = vadd.f32 %v4016_v19, %v5474_v58  ;;  %v4022_v8 = vadd.f32 %v4021_v11, %v3897_v63  ;;  %v2580_v55 = vmax.f32 %v2548_v13, 0.0 }
 0x253   : > { %v2549_v37 = vadd.f32 %v2517_v38, %v2421_v48 }
 0x254   : > { %v2550_v31 = vadd.f32 %v2518_v21, %v2422_v46  ;;  %v2423_v24 = vadd.f32 %v4022_v8, %v5474_v58 }
 0x255   : > { %v2581_v61 = vmax.f32 %v2549_v37, 0.0 }
 0x256   : > { %v2551_v7 = vadd.f32 %v2519_v34, %v2423_v24  ;;  %v2582_v16 = vmax.f32 %v2550_v31, 0.0 }
 0x257   : > { %v3309_v1 = vpack.c.bf16 %v2581_v61, %v2580_v55 }
 0x258   : > { %v2583_v17 = vmax.f32 %v2551_v7, 0.0 }
 0x259   : > { %3344 = vst [vmem:[%s5507_s14 + $0x70] sm:$0xff] %v3309_v1  }
 0x25a   : > { %v3314_v58 = vpack.c.bf16 %v2583_v17, %v2582_v16 }
 0x25c   : > { %3345 = vst [vmem:[%s5507_s14 + $0x78] sm:$0xff] %v3314_v58  }
 0x25d   : > { %4300 = shalt.err (!%p4297_p4)
}
 0x25e   : > { %s4301_s25 = scalar_lea.hbm %s5609_s5, 2048  ;;  %s4305_s8 = scalar_lea.hbm %s5666_s4, 4096 }
 0x25f   : > { %p4302_p7 = scmp.ne.s32.totalorder %s5609_s5, %s4301_s25  ;;  %p4306_p1 = scmp.lt.u32.totalorder %s5609_s5, %s5666_s4 }
 0x260   : > { %p4307_p3 = scmp.lt.u32.totalorder %s4305_s8, %s4301_s25  ;;  %p4309_p9 = scmp.lt.u32.totalorder %s4301_s25, %s5609_s5 }
 0x261   : > { %p4303_p10 = pnand %p4302_p7, %p5676_p11 }
 0x262   : > { %p4308_p8 = por %p4307_p3, %p4306_p1 }
 0x263   : > { %p4304_p12 = pneg %p4303_p10 }
 0x264   : > { %p4310_p0 = por %p4309_p9, %p4308_p8 }
 0x266   : > { %p4311_p6 = pnand %p4310_p0, %p4304_p12 }
 0x268   : > { %4314 = shalt.err (!%p4311_p6)
}
 0x269   : > { %s4375_s24 = smov 64   ;;  %s4376_s13 = smov 4  }
 0x26a   : > { %4077 = dma.vmem_to_hbm [thread:$0]  (%p5676_p11), %s5611_s26, 2048, %s5609_s5, %s2745_s18, %s4375_s24, %s4375_s24, %s4376_s13  }
 0x26b PF: > { %s2774_s6 = sand.u32 1, %s4349_s15   ;;  %p5677_p13 = scmp.ne.s32.totalorder %s5671_s30, 0 }
 0x26c   : > { %p5678_p2 = scmp.ge.s32.totalorder %s4369_s20, 2  ;;  %s2775_s7 = scalar_lea.sflag [#allocation4], %s2774_s6 }
 0x26e   : > { %p4084_p5 = pnand %p5678_p2, %p5677_p13 }
 0x270   : > { %4344 = dma.done.wait (!%p4084_p5), %s2775_s7, 2048  }
 0x271   : > { %4346 = vsyncadd (!%p4084_p5), %s2775_s7, 4294965248  ;;  %s20_s20 = sadd.s32 1, %s4369_s20   ;;  %s5679_s15 = smov %s4353_s16 }
 0x272   : > { %p17_p4 = scmp.ge.s32.totalorder %s20_s20, 4   ;;  %s5680_s16 = smov %s4357_s17 }
 0x273   : > { %s5681_s17 = smov %s4458_s29  ;;  %s5682_s18 = smov %s4365_s19 }
 0x274   : > { %s5683_s19 = smov %s5685_s23  ;;  %19 = sbr.rel (!%p17_p4) target bundleno = 6 (0x6), region = 92 }
 0x27b   :  { %2780 = vsyncpa [#allocation3], 1 }
 0x27c   :  { %2782 = vsyncpa [#allocation3 + $0x1], 1 }
 0x27d   :  { %2783 = vsyncpa [#allocation4], 1 }
 0x27e   :  { %2785 = vsyncpa [#allocation4 + $0x1], 1 }

</bundles_post_ra>
